<compile_context>
chip_gen: v5e
topology: v5e:2x2
jax: 0.10.0
libtpu: 0.0.40
codegen_flags: <defaults>
</compile_context>

<pallas_src>
import math

import numpy as np
import jax
import jax.numpy as jnp
from jax import lax
from jax.experimental import pallas as pl
from jax.experimental.pallas import tpu as pltpu

# ----- module-consistent small sizes -----
S = 8              # sequence length (h*w + text tokens, reduced)
B = 2              # batch (t*b flattened in the module)
D_MODEL = 32       # d_model
NHEADS = 4         # nheads
DH = D_MODEL // NHEADS
DIM_FF = 64        # dim_feedforward
NUM_LAYERS = 3     # num_encoder_layers in MultimodalTransformer
LN_EPS = 1e-5

R = S * B                 # flattened rows, r = s*B + b  (== (S,B,D).reshape(R,D) order)
C = B * NHEADS * S        # expanded key/value columns, c = b*NHEADS*S + h*S + t
NEG_INF = -1e30           # kept in f32 so exp underflows to exactly 0 in masked segments

assert D_MODEL % NHEADS == 0


# --------------------------------------------------------------------------------------
# Host-side constants (hoisted out of the kernel): selection / mask matrices.
# --------------------------------------------------------------------------------------
def _build_attention_constants(compute_dtype):
    r = np.arange(R)
    c = np.arange(C)
    d = np.arange(D_MODEL)
    c_batch = c // (NHEADS * S)
    c_head = (c // S) % NHEADS
    c_row = (c % S) * B + c_batch            # flat row of the key/value token of column c

    sel_k = (r[:, None] == c_row[None, :]).astype(np.float32)                  # (R, C)
    k_mask = ((d[:, None] // DH) == c_head[None, :]).astype(np.float32)        # (D, C)
    sel_v = (c_row[:, None] == r[None, :]).astype(np.float32)                  # (C, R)
    v_mask = (c_head[:, None] == (d[None, :] // DH)).astype(np.float32)        # (C, D)
    seg_ones = ((c[:, None] // S) == (c[None, :] // S)).astype(np.float32)     # (C, C)
    bias_add = np.where((r % B)[:, None] == c_batch[None, :], 0.0, NEG_INF)    # (R, C)

    cd = compute_dtype
    return (jnp.asarray(sel_k, cd), jnp.asarray(k_mask, cd),
            jnp.asarray(bias_add, jnp.float32),
            jnp.asarray(sel_v, cd), jnp.asarray(v_mask, cd),
            jnp.asarray(seg_ones, cd))


def _stack_params(layer_params, compute_dtype):
    """Stack per-layer parameters along a leading layer axis (selected by index_map)."""
    def stack(name):
        return jnp.stack([p[name] for p in layer_params], axis=0)

    weights = tuple(stack(n).astype(compute_dtype)
                    for n in ('wq', 'wk', 'wv', 'wo', 'w1', 'w2'))          # (L, D, *)
    vectors = tuple(stack(n).astype(jnp.float32)[:, None, :]
                    for n in ('bq', 'bk', 'bv', 'bo', 'b1', 'b2',
                              'g1', 'be1', 'g2', 'be2'))                    # (L, 1, dim)
    return weights, vectors


# --------------------------------------------------------------------------------------
# Kernel: one grid step == one encoder layer; activation resident in VMEM scratch.
# --------------------------------------------------------------------------------------
def _make_kernel(compute_dtype):
    cd = compute_dtype
    exact = jnp.dtype(compute_dtype) == jnp.dtype(jnp.float32)
    f32 = jnp.float32
    scale = 1.0 / math.sqrt(DH)

    def layer_norm(x, g, b):
        mu = jnp.mean(x, axis=-1, keepdims=True)
        var = jnp.mean((x - mu) ** 2, axis=-1, keepdims=True)
        inv = (1.0 / jnp.sqrt(var + LN_EPS)) if exact else lax.rsqrt(var + LN_EPS)
        return (x - mu) * inv * g + b

    def kernel(src_ref, pos_ref, sel_k_ref, k_mask_ref, bias_ref,
               sel_v_ref, v_mask_ref, seg_ref,
               wq_ref, wk_ref, wv_ref, wo_ref, w1_ref, w2_ref,
               bq_ref, bk_ref, bv_ref, bo_ref, b1_ref, b2_ref,
               g1_ref, be1_ref, g2_ref, be2_ref,
               out_ref, act_ref):
        l = pl.program_id(0)

        @pl.when(l == 0)
        def _():
            act_ref[...] = src_ref[...]          # load the input activation once

        x = act_ref[...]                          # (R, D) f32 running activation
        qk_in = x + pos_ref[...]                  # q = k = src + pos (value path uses x)

        # hoisted compute-dtype casts (one each)
        x_cd = x.astype(cd)
        qk_cd = qk_in.astype(cd)

        # per-layer parameter slabs (leading layer dim already selected by index_map)
        wq = wq_ref[0]; wk = wk_ref[0]; wv = wv_ref[0]
        wo = wo_ref[0]; w1 = w1_ref[0]; w2 = w2_ref[0]
        bq = bq_ref[0]; bk = bk_ref[0]; bv = bv_ref[0]; bo = bo_ref[0]
        b1 = b1_ref[0]; b2 = b2_ref[0]
        g1 = g1_ref[0]; be1 = be1_ref[0]; g2 = g2_ref[0]; be2 = be2_ref[0]

        # ----- in-projections (f32 accumulation) -----
        q = jnp.dot(qk_cd, wq, preferred_element_type=f32) + bq      # (R, D)
        k = jnp.dot(qk_cd, wk, preferred_element_type=f32) + bk      # (R, D)
        v = jnp.dot(x_cd, wv, preferred_element_type=f32) + bv       # (R, D)

        # ----- multi-head self-attention via precomputed selection / mask constants ----
        # expanded K slab: K_exp[d, c] = k[row(c), d], masked to head(c).
        # dot_general contracts over k's row axis -> no explicit k.T materialization.
        # (selection matmuls have a single nonzero per output, so cd output is exact
        #  relative to a cast of the f32 result.)
        k_exp = lax.dot_general(
            k.astype(cd), sel_k_ref[...],
            dimension_numbers=(((0,), (0,)), ((), ())),
            preferred_element_type=cd) * k_mask_ref[...]             # (D, C) cd
        scores = jnp.dot(q.astype(cd), k_exp,
                         preferred_element_type=f32) * scale + bias_ref[...]   # (R, C) f32
        scores = scores - jnp.max(scores, axis=-1, keepdims=True)
        e = jnp.exp(scores)                                          # masked cols -> exactly 0
        if exact:
            denom = jnp.dot(e, seg_ref[...], preferred_element_type=f32)
            attn = e / jnp.maximum(denom, 1e-20)
        else:
            denom = jnp.dot(e.astype(cd), seg_ref[...], preferred_element_type=f32)
            attn = e * pl.reciprocal(jnp.maximum(denom, 1e-20), approx=True)

        # expanded V slab: V_exp[c, d] = v[row(c), d], masked to head(c).
        v_exp = jnp.dot(sel_v_ref[...], v.astype(cd),
                        preferred_element_type=cd) * v_mask_ref[...]  # (C, D) cd
        attn_out = jnp.dot(attn.astype(cd), v_exp,
                           preferred_element_type=f32)                # (R, D) f32

        # ----- output projection + residual + LayerNorm1 (dropout1 = identity) -----
        attn_out = jnp.dot(attn_out.astype(cd), wo, preferred_element_type=f32) + bo
        x = layer_norm(x + attn_out, g1, be1)

        # ----- FFN (relu) + residual + LayerNorm2 (dropout, dropout2 = identity) -----
        x_cd2 = x.astype(cd)
        h1 = jnp.maximum(jnp.dot(x_cd2, w1, preferred_element_type=f32) + b1, 0.0)
        y = jnp.dot(h1.astype(cd), w2, preferred_element_type=f32) + b2
        x = layer_norm(x + y, g2, be2)

        act_ref[...] = x                          # stays resident for the next layer

        @pl.when(l == pl.num_programs(0) - 1)
        def _():
            out_ref[...] = x.astype(out_ref.dtype)

    return kernel


# --------------------------------------------------------------------------------------
# Wrapper: one pallas_call over the whole encoder stack.
# --------------------------------------------------------------------------------------
def transformer_encoder(src_sbd, pos_sbd, layer_params, *, compute_dtype=jnp.bfloat16):
    """TransformerEncoder (NUM_LAYERS post-norm layers) forward pass.

    src_sbd, pos_sbd: (S, B, D_MODEL) float32, PyTorch seq-first layout.
    compute_dtype: bf16 MXU operands / f32 accumulation (v6e/v7x fast path);
                   use float32 for the exact path (recommended default on v5e).
    """
    assert src_sbd.shape == (S, B, D_MODEL) and pos_sbd.shape == (S, B, D_MODEL)
    assert len(layer_params) == NUM_LAYERS

    src = src_sbd.reshape(R, D_MODEL).astype(jnp.float32)    # free reshape, no transpose
    pos = pos_sbd.reshape(R, D_MODEL).astype(jnp.float32)
    consts = _build_attention_constants(compute_dtype)
    weights, vectors = _stack_params(layer_params, compute_dtype)

    shared = (src, pos) + consts                              # constant across layers
    args = shared + weights + vectors

    def full_spec(a):                                         # same block every step
        nd = a.ndim
        return pl.BlockSpec(a.shape, lambda l, _nd=nd: (0,) * _nd)

    def layer_spec(a):                                        # select layer slab l
        return pl.BlockSpec((1,) + a.shape[1:], lambda l: (l, 0, 0))

    in_specs = [full_spec(a) for a in shared] + [layer_spec(a) for a in weights + vectors]

    out = pl.pallas_call(
        _make_kernel(compute_dtype),
        out_shape=jax.ShapeDtypeStruct((R, D_MODEL), jnp.float32),
        grid=(NUM_LAYERS,),
        in_specs=in_specs,
        out_specs=pl.BlockSpec((R, D_MODEL), lambda l: (0, 0)),
        scratch_shapes=[pltpu.VMEM((R, D_MODEL), jnp.float32)],   # resident activation
        compiler_params=pltpu.CompilerParams(
            dimension_semantics=("arbitrary",)),              # layers are sequential
    )(*args)
    return out.reshape(S, B, D_MODEL)                         # free reshape back


# --------------------------------------------------------------------------------------
# Pure-JAX reference + parameter construction.
# --------------------------------------------------------------------------------------
def ref_encoder(src_sbd, pos_sbd, layer_params):
    x = jnp.transpose(src_sbd, (1, 0, 2)).astype(jnp.float32)   # (B, S, D)
    pos = jnp.transpose(pos_sbd, (1, 0, 2)).astype(jnp.float32)

    def ln(t, g, b):
        return (t - t.mean(-1, keepdims=True)) / jnp.sqrt(
            t.var(-1, keepdims=True) + LN_EPS) * g + b

    for p in layer_params:
        qk = x + pos
        q = qk @ p['wq'] + p['bq']
        k = qk @ p['wk'] + p['bk']
        v = x @ p['wv'] + p['bv']
        qh = q.reshape(B, S, NHEADS, DH)
        kh = k.reshape(B, S, NHEADS, DH)
        vh = v.reshape(B, S, NHEADS, DH)
        scores = jnp.einsum('bqhd,bkhd->bhqk', qh, kh) / math.sqrt(DH)
        attn = jax.nn.softmax(scores, axis=-1)
        o = jnp.einsum('bhqk,bkhd->bqhd', attn, vh).reshape(B, S, D_MODEL)
        o = o @ p['wo'] + p['bo']
        x = ln(x + o, p['g1'], p['be1'])
        h = jnp.maximum(x @ p['w1'] + p['b1'], 0.0)
        y = h @ p['w2'] + p['b2']
        x = ln(x + y, p['g2'], p['be2'])
    return jnp.transpose(x, (1, 0, 2))


def make_params(key, num_layers=NUM_LAYERS):
    def w(k, shape, scale=0.1):
        return (scale * jax.random.normal(k, shape)).astype(jnp.float32)

    layers = []
    for lk in jax.random.split(key, num_layers):
        ks = jax.random.split(lk, 16)
        layers.append({
            # attention in-projection (pre-transposed so the kernel does x @ W)
            'wq': w(ks[0], (D_MODEL, D_MODEL)), 'bq': w(ks[1], (D_MODEL,)),
            'wk': w(ks[2], (D_MODEL, D_MODEL)), 'bk': w(ks[3], (D_MODEL,)),
            'wv': w(ks[4], (D_MODEL, D_MODEL)), 'bv': w(ks[5], (D_MODEL,)),
            # attention out-projection
            'wo': w(ks[6], (D_MODEL, D_MODEL)), 'bo': w(ks[7], (D_MODEL,)),
            # LayerNorm1
            'g1': 1.0 + w(ks[8], (D_MODEL,)), 'be1': w(ks[9], (D_MODEL,)),
            # FFN
            'w1': w(ks[10], (D_MODEL, DIM_FF)), 'b1': w(ks[11], (DIM_FF,)),
            'w2': w(ks[12], (DIM_FF, D_MODEL)), 'b2': w(ks[13], (D_MODEL,)),
            # LayerNorm2
            'g2': 1.0 + w(ks[14], (D_MODEL,)), 'be2': w(ks[15], (D_MODEL,)),
        })
    return layers


if __name__ == "__main__":
    key = jax.random.PRNGKey(0)
    k_src, k_pos, k_par = jax.random.split(key, 3)
    src = jax.random.normal(k_src, (S, B, D_MODEL), dtype=jnp.float32)
    pos = jax.random.normal(k_pos, (S, B, D_MODEL), dtype=jnp.float32)
    layer_params = make_params(k_par)

    with jax.default_matmul_precision("highest"):
        ref = jax.block_until_ready(ref_encoder(src, pos, layer_params))

    # exact path: f32 MXU operands, exact divides -- tight check of the math
    out_f32 = jax.block_until_ready(
        transformer_encoder(src, pos, layer_params, compute_dtype=jnp.float32))
    assert out_f32.shape == (S, B, D_MODEL)
    assert jnp.allclose(out_f32, ref, atol=5e-4, rtol=5e-4), "f32 kernel mismatch vs reference"

    # fast path: bf16 MXU operands (f32 accumulation), EUP reciprocal / rsqrt
    out_bf16 = jax.block_until_ready(
        transformer_encoder(src, pos, layer_params, compute_dtype=jnp.bfloat16))
    assert out_bf16.shape == (S, B, D_MODEL)
    assert jnp.allclose(out_bf16, ref, atol=1.5e-1, rtol=1.5e-1), "bf16 kernel drift vs reference"

    print("KERNEL_OK")
</pallas_src>

<mosaic_0001>
module attributes {stable_mosaic.version = 11 : i64} {
  func.func @kernel(%arg0: i32, %arg1: memref<16x32xf32, #tpu.memory_space<vmem>>, %arg2: memref<16x32xf32, #tpu.memory_space<vmem>>, %arg3: memref<16x64xf32, #tpu.memory_space<vmem>>, %arg4: memref<32x64xf32, #tpu.memory_space<vmem>>, %arg5: memref<16x64xf32, #tpu.memory_space<vmem>>, %arg6: memref<64x16xf32, #tpu.memory_space<vmem>>, %arg7: memref<64x32xf32, #tpu.memory_space<vmem>>, %arg8: memref<64x64xf32, #tpu.memory_space<vmem>>, %arg9: memref<1x32x32xf32, #tpu.memory_space<vmem>>, %arg10: memref<1x32x32xf32, #tpu.memory_space<vmem>>, %arg11: memref<1x32x32xf32, #tpu.memory_space<vmem>>, %arg12: memref<1x32x32xf32, #tpu.memory_space<vmem>>, %arg13: memref<1x32x64xf32, #tpu.memory_space<vmem>>, %arg14: memref<1x64x32xf32, #tpu.memory_space<vmem>>, %arg15: memref<1x1x32xf32, #tpu.memory_space<vmem>>, %arg16: memref<1x1x32xf32, #tpu.memory_space<vmem>>, %arg17: memref<1x1x32xf32, #tpu.memory_space<vmem>>, %arg18: memref<1x1x32xf32, #tpu.memory_space<vmem>>, %arg19: memref<1x1x64xf32, #tpu.memory_space<vmem>>, %arg20: memref<1x1x32xf32, #tpu.memory_space<vmem>>, %arg21: memref<1x1x32xf32, #tpu.memory_space<vmem>>, %arg22: memref<1x1x32xf32, #tpu.memory_space<vmem>>, %arg23: memref<1x1x32xf32, #tpu.memory_space<vmem>>, %arg24: memref<1x1x32xf32, #tpu.memory_space<vmem>>, %arg25: memref<16x32xf32, #tpu.memory_space<vmem>>, %arg26: memref<16x32xf32, #tpu.memory_space<vmem>>) attributes {dimension_semantics = [#tpu.dimension_semantics<arbitrary>], iteration_bounds = array<i64: 3>, scalar_prefetch = 0 : i64, scratch_operands = 1 : i64, tpu.core_type = #tpu.core_type<tc>, window_params = [{pipeline_mode = #tpu.pipeline_mode<synchronous>, transform_indices = @transform_0, window_bounds = array<i64: 16, 32>}, {pipeline_mode = #tpu.pipeline_mode<synchronous>, transform_indices = @transform_1, window_bounds = array<i64: 16, 32>}, {pipeline_mode = #tpu.pipeline_mode<synchronous>, transform_indices = @transform_2, window_bounds = array<i64: 16, 64>}, {pipeline_mode = #tpu.pipeline_mode<synchronous>, transform_indices = @transform_3, window_bounds = array<i64: 32, 64>}, {pipeline_mode = #tpu.pipeline_mode<synchronous>, transform_indices = @transform_4, window_bounds = array<i64: 16, 64>}, {pipeline_mode = #tpu.pipeline_mode<synchronous>, transform_indices = @transform_5, window_bounds = array<i64: 64, 16>}, {pipeline_mode = #tpu.pipeline_mode<synchronous>, transform_indices = @transform_6, window_bounds = array<i64: 64, 32>}, {pipeline_mode = #tpu.pipeline_mode<synchronous>, transform_indices = @transform_7, window_bounds = array<i64: 64, 64>}, {transform_indices = @transform_8, window_bounds = array<i64: 1, 32, 32>}, {transform_indices = @transform_9, window_bounds = array<i64: 1, 32, 32>}, {transform_indices = @transform_10, window_bounds = array<i64: 1, 32, 32>}, {transform_indices = @transform_11, window_bounds = array<i64: 1, 32, 32>}, {transform_indices = @transform_12, window_bounds = array<i64: 1, 32, 64>}, {transform_indices = @transform_13, window_bounds = array<i64: 1, 64, 32>}, {transform_indices = @transform_14, window_bounds = array<i64: 1, 1, 32>}, {transform_indices = @transform_15, window_bounds = array<i64: 1, 1, 32>}, {transform_indices = @transform_16, window_bounds = array<i64: 1, 1, 32>}, {transform_indices = @transform_17, window_bounds = array<i64: 1, 1, 32>}, {transform_indices = @transform_18, window_bounds = array<i64: 1, 1, 64>}, {transform_indices = @transform_19, window_bounds = array<i64: 1, 1, 32>}, {transform_indices = @transform_20, window_bounds = array<i64: 1, 1, 32>}, {transform_indices = @transform_21, window_bounds = array<i64: 1, 1, 32>}, {transform_indices = @transform_22, window_bounds = array<i64: 1, 1, 32>}, {transform_indices = @transform_23, window_bounds = array<i64: 1, 1, 32>}, {pipeline_mode = #tpu.pipeline_mode<synchronous>, transform_indices = @transform_24, window_bounds = array<i64: 16, 32>}]} {
    %c0_i32 = arith.constant 0 : i32
    %0 = arith.cmpi eq, %arg0, %c0_i32 : i32
    %1 = arith.extui %0 : i1 to i32
    %c0_i32_0 = arith.constant 0 : i32
    %2 = arith.cmpi ne, %1, %c0_i32_0 : i32
    scf.if %2 {
      %c0_93 = arith.constant 0 : index
      %c0_94 = arith.constant 0 : index
      %136 = vector.load %arg1[%c0_93, %c0_94] : memref<16x32xf32, #tpu.memory_space<vmem>>, vector<16x32xf32>
      %c0_95 = arith.constant 0 : index
      %c0_96 = arith.constant 0 : index
      %137 = vector.load %arg26[%c0_95, %c0_96] : memref<16x32xf32, #tpu.memory_space<vmem>>, vector<16x32xf32>
      tpu.vector_store %arg26[%c0_95, %c0_96], %136 {strides = array<i32>} : memref<16x32xf32, #tpu.memory_space<vmem>>, vector<16x32xf32>,
    } else {
    }
    %c0 = arith.constant 0 : index
    %c0_1 = arith.constant 0 : index
    %3 = vector.load %arg26[%c0, %c0_1] : memref<16x32xf32, #tpu.memory_space<vmem>>, vector<16x32xf32>
    %c0_2 = arith.constant 0 : index
    %c0_3 = arith.constant 0 : index
    %4 = vector.load %arg2[%c0_2, %c0_3] : memref<16x32xf32, #tpu.memory_space<vmem>>, vector<16x32xf32>
    %5 = arith.addf %3, %4 : vector<16x32xf32>
    %c0_4 = arith.constant 0 : index
    %c0_5 = arith.constant 0 : index
    %c0_6 = arith.constant 0 : index
    %6 = vector.load %arg9[%c0_4, %c0_5, %c0_6] : memref<1x32x32xf32, #tpu.memory_space<vmem>>, vector<1x32x32xf32>
    %7 = vector.shape_cast %6 : vector<1x32x32xf32> to vector<32x32xf32>
    %c0_7 = arith.constant 0 : index
    %c0_8 = arith.constant 0 : index
    %c0_9 = arith.constant 0 : index
    %8 = vector.load %arg10[%c0_7, %c0_8, %c0_9] : memref<1x32x32xf32, #tpu.memory_space<vmem>>, vector<1x32x32xf32>
    %9 = vector.shape_cast %8 : vector<1x32x32xf32> to vector<32x32xf32>
    %c0_10 = arith.constant 0 : index
    %c0_11 = arith.constant 0 : index
    %c0_12 = arith.constant 0 : index
    %10 = vector.load %arg11[%c0_10, %c0_11, %c0_12] : memref<1x32x32xf32, #tpu.memory_space<vmem>>, vector<1x32x32xf32>
    %11 = vector.shape_cast %10 : vector<1x32x32xf32> to vector<32x32xf32>
    %c0_13 = arith.constant 0 : index
    %c0_14 = arith.constant 0 : index
    %c0_15 = arith.constant 0 : index
    %12 = vector.load %arg12[%c0_13, %c0_14, %c0_15] : memref<1x32x32xf32, #tpu.memory_space<vmem>>, vector<1x32x32xf32>
    %13 = vector.shape_cast %12 : vector<1x32x32xf32> to vector<32x32xf32>
    %c0_16 = arith.constant 0 : index
    %c0_17 = arith.constant 0 : index
    %c0_18 = arith.constant 0 : index
    %14 = vector.load %arg13[%c0_16, %c0_17, %c0_18] : memref<1x32x64xf32, #tpu.memory_space<vmem>>, vector<1x32x64xf32>
    %15 = vector.shape_cast %14 : vector<1x32x64xf32> to vector<32x64xf32>
    %c0_19 = arith.constant 0 : index
    %c0_20 = arith.constant 0 : index
    %c0_21 = arith.constant 0 : index
    %16 = vector.load %arg14[%c0_19, %c0_20, %c0_21] : memref<1x64x32xf32, #tpu.memory_space<vmem>>, vector<1x64x32xf32>
    %17 = vector.shape_cast %16 : vector<1x64x32xf32> to vector<64x32xf32>
    %c0_22 = arith.constant 0 : index
    %c0_23 = arith.constant 0 : index
    %c0_24 = arith.constant 0 : index
    %18 = vector.load %arg15[%c0_22, %c0_23, %c0_24] : memref<1x1x32xf32, #tpu.memory_space<vmem>>, vector<1x1x32xf32>
    %19 = vector.shape_cast %18 : vector<1x1x32xf32> to vector<1x32xf32>
    %c0_25 = arith.constant 0 : index
    %c0_26 = arith.constant 0 : index
    %c0_27 = arith.constant 0 : index
    %20 = vector.load %arg16[%c0_25, %c0_26, %c0_27] : memref<1x1x32xf32, #tpu.memory_space<vmem>>, vector<1x1x32xf32>
    %21 = vector.shape_cast %20 : vector<1x1x32xf32> to vector<1x32xf32>
    %c0_28 = arith.constant 0 : index
    %c0_29 = arith.constant 0 : index
    %c0_30 = arith.constant 0 : index
    %22 = vector.load %arg17[%c0_28, %c0_29, %c0_30] : memref<1x1x32xf32, #tpu.memory_space<vmem>>, vector<1x1x32xf32>
    %23 = vector.shape_cast %22 : vector<1x1x32xf32> to vector<1x32xf32>
    %c0_31 = arith.constant 0 : index
    %c0_32 = arith.constant 0 : index
    %c0_33 = arith.constant 0 : index
    %24 = vector.load %arg18[%c0_31, %c0_32, %c0_33] : memref<1x1x32xf32, #tpu.memory_space<vmem>>, vector<1x1x32xf32>
    %25 = vector.shape_cast %24 : vector<1x1x32xf32> to vector<1x32xf32>
    %c0_34 = arith.constant 0 : index
    %c0_35 = arith.constant 0 : index
    %c0_36 = arith.constant 0 : index
    %26 = vector.load %arg19[%c0_34, %c0_35, %c0_36] : memref<1x1x64xf32, #tpu.memory_space<vmem>>, vector<1x1x64xf32>
    %27 = vector.shape_cast %26 : vector<1x1x64xf32> to vector<1x64xf32>
    %c0_37 = arith.constant 0 : index
    %c0_38 = arith.constant 0 : index
    %c0_39 = arith.constant 0 : index
    %28 = vector.load %arg20[%c0_37, %c0_38, %c0_39] : memref<1x1x32xf32, #tpu.memory_space<vmem>>, vector<1x1x32xf32>
    %29 = vector.shape_cast %28 : vector<1x1x32xf32> to vector<1x32xf32>
    %c0_40 = arith.constant 0 : index
    %c0_41 = arith.constant 0 : index
    %c0_42 = arith.constant 0 : index
    %30 = vector.load %arg21[%c0_40, %c0_41, %c0_42] : memref<1x1x32xf32, #tpu.memory_space<vmem>>, vector<1x1x32xf32>
    %31 = vector.shape_cast %30 : vector<1x1x32xf32> to vector<1x32xf32>
    %c0_43 = arith.constant 0 : index
    %c0_44 = arith.constant 0 : index
    %c0_45 = arith.constant 0 : index
    %32 = vector.load %arg22[%c0_43, %c0_44, %c0_45] : memref<1x1x32xf32, #tpu.memory_space<vmem>>, vector<1x1x32xf32>
    %33 = vector.shape_cast %32 : vector<1x1x32xf32> to vector<1x32xf32>
    %c0_46 = arith.constant 0 : index
    %c0_47 = arith.constant 0 : index
    %c0_48 = arith.constant 0 : index
    %34 = vector.load %arg23[%c0_46, %c0_47, %c0_48] : memref<1x1x32xf32, #tpu.memory_space<vmem>>, vector<1x1x32xf32>
    %35 = vector.shape_cast %34 : vector<1x1x32xf32> to vector<1x32xf32>
    %c0_49 = arith.constant 0 : index
    %c0_50 = arith.constant 0 : index
    %c0_51 = arith.constant 0 : index
    %36 = vector.load %arg24[%c0_49, %c0_50, %c0_51] : memref<1x1x32xf32, #tpu.memory_space<vmem>>, vector<1x1x32xf32>
    %37 = vector.shape_cast %36 : vector<1x1x32xf32> to vector<1x32xf32>
    %cst = arith.constant dense<0.000000e+00> : vector<16x32xf32>
    %38 = tpu.matmul %5, %7, %cst {dimension_numbers = #tpu.dot_dimension_numbers<[1], [0], [0], [1], [0, 0, 1, 1], [], []>} : vector<16x32xf32>, vector<32x32xf32>, vector<16x32xf32> -> vector<16x32xf32>
    %39 = vector.broadcast %19 : vector<1x32xf32> to vector<16x32xf32>
    %40 = arith.addf %38, %39 : vector<16x32xf32>
    %cst_52 = arith.constant dense<0.000000e+00> : vector<16x32xf32>
    %41 = tpu.matmul %5, %9, %cst_52 {dimension_numbers = #tpu.dot_dimension_numbers<[1], [0], [0], [1], [0, 0, 1, 1], [], []>} : vector<16x32xf32>, vector<32x32xf32>, vector<16x32xf32> -> vector<16x32xf32>
    %42 = vector.broadcast %21 : vector<1x32xf32> to vector<16x32xf32>
    %43 = arith.addf %41, %42 : vector<16x32xf32>
    %cst_53 = arith.constant dense<0.000000e+00> : vector<16x32xf32>
    %44 = tpu.matmul %3, %11, %cst_53 {dimension_numbers = #tpu.dot_dimension_numbers<[1], [0], [0], [1], [0, 0, 1, 1], [], []>} : vector<16x32xf32>, vector<32x32xf32>, vector<16x32xf32> -> vector<16x32xf32>
    %45 = vector.broadcast %23 : vector<1x32xf32> to vector<16x32xf32>
    %46 = arith.addf %44, %45 : vector<16x32xf32>
    %c0_54 = arith.constant 0 : index
    %c0_55 = arith.constant 0 : index
    %47 = vector.load %arg3[%c0_54, %c0_55] : memref<16x64xf32, #tpu.memory_space<vmem>>, vector<16x64xf32>
    %cst_56 = arith.constant dense<0.000000e+00> : vector<32x64xf32>
    %48 = tpu.matmul %43, %47, %cst_56 {dimension_numbers = #tpu.dot_dimension_numbers<[0], [0], [1], [1], [0, 1, 1, 1], [], []>} : vector<16x32xf32>, vector<16x64xf32>, vector<32x64xf32> -> vector<32x64xf32>
    %c0_57 = arith.constant 0 : index
    %c0_58 = arith.constant 0 : index
    %49 = vector.load %arg4[%c0_57, %c0_58] : memref<32x64xf32, #tpu.memory_space<vmem>>, vector<32x64xf32>
    %50 = arith.mulf %48, %49 : vector<32x64xf32>
    %cst_59 = arith.constant dense<0.000000e+00> : vector<16x64xf32>
    %51 = tpu.matmul %40, %50, %cst_59 {dimension_numbers = #tpu.dot_dimension_numbers<[1], [0], [0], [1], [0, 0, 1, 1], [], []>} : vector<16x32xf32>, vector<32x64xf32>, vector<16x64xf32> -> vector<16x64xf32>
    %cst_60 = arith.constant 0.353553385 : f32
    %52 = vector.broadcast %cst_60 : f32 to vector<16x64xf32>
    %53 = arith.mulf %51, %52 : vector<16x64xf32>
    %c0_61 = arith.constant 0 : index
    %c0_62 = arith.constant 0 : index
    %54 = vector.load %arg5[%c0_61, %c0_62] : memref<16x64xf32, #tpu.memory_space<vmem>>, vector<16x64xf32>
    %55 = arith.addf %53, %54 : vector<16x64xf32>
    %cst_63 = arith.constant dense<0xFF800000> : vector<16xf32>
    %56 = vector.multi_reduction <maximumf>, %55, %cst_63 [1] : vector<16x64xf32> to vector<16xf32>
    %57 = vector.shape_cast %56 : vector<16xf32> to vector<16x1xf32>
    %58 = vector.broadcast %57 : vector<16x1xf32> to vector<16x64xf32>
    %59 = arith.subf %55, %58 : vector<16x64xf32>
    %60 = math.exp %59 : vector<16x64xf32>
    %c0_64 = arith.constant 0 : index
    %c0_65 = arith.constant 0 : index
    %61 = vector.load %arg8[%c0_64, %c0_65] : memref<64x64xf32, #tpu.memory_space<vmem>>, vector<64x64xf32>
    %cst_66 = arith.constant dense<0.000000e+00> : vector<16x64xf32>
    %62 = tpu.matmul %60, %61, %cst_66 {dimension_numbers = #tpu.dot_dimension_numbers<[1], [0], [0], [1], [0, 0, 1, 1], [], []>} : vector<16x64xf32>, vector<64x64xf32>, vector<16x64xf32> -> vector<16x64xf32>
    %cst_67 = arith.constant 9.99999968E-21 : f32
    %63 = vector.broadcast %cst_67 : f32 to vector<16x64xf32>
    %64 = arith.maximumf %62, %63 : vector<16x64xf32>
    %65 = arith.divf %60, %64 : vector<16x64xf32>
    %c0_68 = arith.constant 0 : index
    %c0_69 = arith.constant 0 : index
    %66 = vector.load %arg6[%c0_68, %c0_69] : memref<64x16xf32, #tpu.memory_space<vmem>>, vector<64x16xf32>
    %cst_70 = arith.constant dense<0.000000e+00> : vector<64x32xf32>
    %67 = tpu.matmul %66, %46, %cst_70 {dimension_numbers = #tpu.dot_dimension_numbers<[1], [0], [0], [1], [0, 0, 1, 1], [], []>} : vector<64x16xf32>, vector<16x32xf32>, vector<64x32xf32> -> vector<64x32xf32>
    %c0_71 = arith.constant 0 : index
    %c0_72 = arith.constant 0 : index
    %68 = vector.load %arg7[%c0_71, %c0_72] : memref<64x32xf32, #tpu.memory_space<vmem>>, vector<64x32xf32>
    %69 = arith.mulf %67, %68 : vector<64x32xf32>
    %cst_73 = arith.constant dense<0.000000e+00> : vector<16x32xf32>
    %70 = tpu.matmul %65, %69, %cst_73 {dimension_numbers = #tpu.dot_dimension_numbers<[1], [0], [0], [1], [0, 0, 1, 1], [], []>} : vector<16x64xf32>, vector<64x32xf32>, vector<16x32xf32> -> vector<16x32xf32>
    %cst_74 = arith.constant dense<0.000000e+00> : vector<16x32xf32>
    %71 = tpu.matmul %70, %13, %cst_74 {dimension_numbers = #tpu.dot_dimension_numbers<[1], [0], [0], [1], [0, 0, 1, 1], [], []>} : vector<16x32xf32>, vector<32x32xf32>, vector<16x32xf32> -> vector<16x32xf32>
    %72 = vector.broadcast %25 : vector<1x32xf32> to vector<16x32xf32>
    %73 = arith.addf %71, %72 : vector<16x32xf32>
    %74 = arith.addf %3, %73 : vector<16x32xf32>
    %cst_75 = arith.constant dense<0.000000e+00> : vector<16xf32>
    %75 = vector.multi_reduction <add>, %74, %cst_75 [1] : vector<16x32xf32> to vector<16xf32>
    %76 = vector.shape_cast %75 : vector<16xf32> to vector<16x1xf32>
    %cst_76 = arith.constant 3.200000e+01 : f32
    %77 = vector.broadcast %cst_76 : f32 to vector<16x1xf32>
    %78 = arith.divf %76, %77 : vector<16x1xf32>
    %79 = vector.broadcast %78 : vector<16x1xf32> to vector<16x32xf32>
    %80 = arith.subf %74, %79 : vector<16x32xf32>
    %81 = arith.mulf %80, %80 : vector<16x32xf32>
    %cst_77 = arith.constant dense<0.000000e+00> : vector<16xf32>
    %82 = vector.multi_reduction <add>, %81, %cst_77 [1] : vector<16x32xf32> to vector<16xf32>
    %83 = vector.shape_cast %82 : vector<16xf32> to vector<16x1xf32>
    %cst_78 = arith.constant 3.200000e+01 : f32
    %84 = vector.broadcast %cst_78 : f32 to vector<16x1xf32>
    %85 = arith.divf %83, %84 : vector<16x1xf32>
    %cst_79 = arith.constant 9.99999974E-6 : f32
    %86 = vector.broadcast %cst_79 : f32 to vector<16x1xf32>
    %87 = arith.addf %85, %86 : vector<16x1xf32>
    %88 = math.sqrt %87 : vector<16x1xf32>
    %cst_80 = arith.constant 1.000000e+00 : f32
    %89 = vector.broadcast %cst_80 : f32 to vector<16x1xf32>
    %90 = arith.divf %89, %88 : vector<16x1xf32>
    %91 = vector.broadcast %78 : vector<16x1xf32> to vector<16x32xf32>
    %92 = arith.subf %74, %91 : vector<16x32xf32>
    %93 = vector.broadcast %90 : vector<16x1xf32> to vector<16x32xf32>
    %94 = arith.mulf %92, %93 : vector<16x32xf32>
    %95 = vector.broadcast %31 : vector<1x32xf32> to vector<16x32xf32>
    %96 = arith.mulf %94, %95 : vector<16x32xf32>
    %97 = vector.broadcast %33 : vector<1x32xf32> to vector<16x32xf32>
    %98 = arith.addf %96, %97 : vector<16x32xf32>
    %cst_81 = arith.constant dense<0.000000e+00> : vector<16x64xf32>
    %99 = tpu.matmul %98, %15, %cst_81 {dimension_numbers = #tpu.dot_dimension_numbers<[1], [0], [0], [1], [0, 0, 1, 1], [], []>} : vector<16x32xf32>, vector<32x64xf32>, vector<16x64xf32> -> vector<16x64xf32>
    %100 = vector.broadcast %27 : vector<1x64xf32> to vector<16x64xf32>
    %101 = arith.addf %99, %100 : vector<16x64xf32>
    %cst_82 = arith.constant 0.000000e+00 : f32
    %102 = vector.broadcast %cst_82 : f32 to vector<16x64xf32>
    %103 = arith.maximumf %101, %102 : vector<16x64xf32>
    %cst_83 = arith.constant dense<0.000000e+00> : vector<16x32xf32>
    %104 = tpu.matmul %103, %17, %cst_83 {dimension_numbers = #tpu.dot_dimension_numbers<[1], [0], [0], [1], [0, 0, 1, 1], [], []>} : vector<16x64xf32>, vector<64x32xf32>, vector<16x32xf32> -> vector<16x32xf32>
    %105 = vector.broadcast %29 : vector<1x32xf32> to vector<16x32xf32>
    %106 = arith.addf %104, %105 : vector<16x32xf32>
    %107 = arith.addf %98, %106 : vector<16x32xf32>
    %cst_84 = arith.constant dense<0.000000e+00> : vector<16xf32>
    %108 = vector.multi_reduction <add>, %107, %cst_84 [1] : vector<16x32xf32> to vector<16xf32>
    %109 = vector.shape_cast %108 : vector<16xf32> to vector<16x1xf32>
    %cst_85 = arith.constant 3.200000e+01 : f32
    %110 = vector.broadcast %cst_85 : f32 to vector<16x1xf32>
    %111 = arith.divf %109, %110 : vector<16x1xf32>
    %112 = vector.broadcast %111 : vector<16x1xf32> to vector<16x32xf32>
    %113 = arith.subf %107, %112 : vector<16x32xf32>
    %114 = arith.mulf %113, %113 : vector<16x32xf32>
    %cst_86 = arith.constant dense<0.000000e+00> : vector<16xf32>
    %115 = vector.multi_reduction <add>, %114, %cst_86 [1] : vector<16x32xf32> to vector<16xf32>
    %116 = vector.shape_cast %115 : vector<16xf32> to vector<16x1xf32>
    %cst_87 = arith.constant 3.200000e+01 : f32
    %117 = vector.broadcast %cst_87 : f32 to vector<16x1xf32>
    %118 = arith.divf %116, %117 : vector<16x1xf32>
    %cst_88 = arith.constant 9.99999974E-6 : f32
    %119 = vector.broadcast %cst_88 : f32 to vector<16x1xf32>
    %120 = arith.addf %118, %119 : vector<16x1xf32>
    %121 = math.sqrt %120 : vector<16x1xf32>
    %cst_89 = arith.constant 1.000000e+00 : f32
    %122 = vector.broadcast %cst_89 : f32 to vector<16x1xf32>
    %123 = arith.divf %122, %121 : vector<16x1xf32>
    %124 = vector.broadcast %111 : vector<16x1xf32> to vector<16x32xf32>
    %125 = arith.subf %107, %124 : vector<16x32xf32>
    %126 = vector.broadcast %123 : vector<16x1xf32> to vector<16x32xf32>
    %127 = arith.mulf %125, %126 : vector<16x32xf32>
    %128 = vector.broadcast %35 : vector<1x32xf32> to vector<16x32xf32>
    %129 = arith.mulf %127, %128 : vector<16x32xf32>
    %130 = vector.broadcast %37 : vector<1x32xf32> to vector<16x32xf32>
    %131 = arith.addf %129, %130 : vector<16x32xf32>
    %c0_90 = arith.constant 0 : index
    %c0_91 = arith.constant 0 : index
    %132 = vector.load %arg26[%c0_90, %c0_91] : memref<16x32xf32, #tpu.memory_space<vmem>>, vector<16x32xf32>
    tpu.vector_store %arg26[%c0_90, %c0_91], %131 {strides = array<i32>} : memref<16x32xf32, #tpu.memory_space<vmem>>, vector<16x32xf32>,
    %c2_i32 = arith.constant 2 : i32
    %133 = arith.cmpi eq, %arg0, %c2_i32 : i32
    %134 = arith.extui %133 : i1 to i32
    %c0_i32_92 = arith.constant 0 : i32
    %135 = arith.cmpi ne, %134, %c0_i32_92 : i32
    scf.if %135 {
      %c0_93 = arith.constant 0 : index
      %c0_94 = arith.constant 0 : index
      %136 = vector.load %arg25[%c0_93, %c0_94] : memref<16x32xf32, #tpu.memory_space<vmem>>, vector<16x32xf32>
      tpu.vector_store %arg25[%c0_93, %c0_94], %131 {strides = array<i32>} : memref<16x32xf32, #tpu.memory_space<vmem>>, vector<16x32xf32>,
    } else {
    }
    return
  }
  func.func @transform_0(%arg0: i32) -> (i32, i32) {
    %c0_i32 = arith.constant 0 : i32
    %c0_i32_0 = arith.constant 0 : i32
    %c0_i32_1 = arith.constant 0 : i32
    return %c0_i32, %c0_i32_0 : i32, i32
  }
  func.func @transform_1(%arg0: i32) -> (i32, i32) {
    %c0_i32 = arith.constant 0 : i32
    %c0_i32_0 = arith.constant 0 : i32
    %c0_i32_1 = arith.constant 0 : i32
    return %c0_i32, %c0_i32_0 : i32, i32
  }
  func.func @transform_2(%arg0: i32) -> (i32, i32) {
    %c0_i32 = arith.constant 0 : i32
    %c0_i32_0 = arith.constant 0 : i32
    %c0_i32_1 = arith.constant 0 : i32
    return %c0_i32, %c0_i32_0 : i32, i32
  }
  func.func @transform_3(%arg0: i32) -> (i32, i32) {
    %c0_i32 = arith.constant 0 : i32
    %c0_i32_0 = arith.constant 0 : i32
    %c0_i32_1 = arith.constant 0 : i32
    return %c0_i32, %c0_i32_0 : i32, i32
  }
  func.func @transform_4(%arg0: i32) -> (i32, i32) {
    %c0_i32 = arith.constant 0 : i32
    %c0_i32_0 = arith.constant 0 : i32
    %c0_i32_1 = arith.constant 0 : i32
    return %c0_i32, %c0_i32_0 : i32, i32
  }
  func.func @transform_5(%arg0: i32) -> (i32, i32) {
    %c0_i32 = arith.constant 0 : i32
    %c0_i32_0 = arith.constant 0 : i32
    %c0_i32_1 = arith.constant 0 : i32
    return %c0_i32, %c0_i32_0 : i32, i32
  }
  func.func @transform_6(%arg0: i32) -> (i32, i32) {
    %c0_i32 = arith.constant 0 : i32
    %c0_i32_0 = arith.constant 0 : i32
    %c0_i32_1 = arith.constant 0 : i32
    return %c0_i32, %c0_i32_0 : i32, i32
  }
  func.func @transform_7(%arg0: i32) -> (i32, i32) {
    %c0_i32 = arith.constant 0 : i32
    %c0_i32_0 = arith.constant 0 : i32
    %c0_i32_1 = arith.constant 0 : i32
    return %c0_i32, %c0_i32_0 : i32, i32
  }
  func.func @transform_8(%arg0: i32) -> (i32, i32, i32) {
    %c0_i32 = arith.constant 0 : i32
    %c0_i32_0 = arith.constant 0 : i32
    %c0_i32_1 = arith.constant 0 : i32
    return %arg0, %c0_i32, %c0_i32_0 : i32, i32, i32
  }
  func.func @transform_9(%arg0: i32) -> (i32, i32, i32) {
    %c0_i32 = arith.constant 0 : i32
    %c0_i32_0 = arith.constant 0 : i32
    %c0_i32_1 = arith.constant 0 : i32
    return %arg0, %c0_i32, %c0_i32_0 : i32, i32, i32
  }
  func.func @transform_10(%arg0: i32) -> (i32, i32, i32) {
    %c0_i32 = arith.constant 0 : i32
    %c0_i32_0 = arith.constant 0 : i32
    %c0_i32_1 = arith.constant 0 : i32
    return %arg0, %c0_i32, %c0_i32_0 : i32, i32, i32
  }
  func.func @transform_11(%arg0: i32) -> (i32, i32, i32) {
    %c0_i32 = arith.constant 0 : i32
    %c0_i32_0 = arith.constant 0 : i32
    %c0_i32_1 = arith.constant 0 : i32
    return %arg0, %c0_i32, %c0_i32_0 : i32, i32, i32
  }
  func.func @transform_12(%arg0: i32) -> (i32, i32, i32) {
    %c0_i32 = arith.constant 0 : i32
    %c0_i32_0 = arith.constant 0 : i32
    %c0_i32_1 = arith.constant 0 : i32
    return %arg0, %c0_i32, %c0_i32_0 : i32, i32, i32
  }
  func.func @transform_13(%arg0: i32) -> (i32, i32, i32) {
    %c0_i32 = arith.constant 0 : i32
    %c0_i32_0 = arith.constant 0 : i32
    %c0_i32_1 = arith.constant 0 : i32
    return %arg0, %c0_i32, %c0_i32_0 : i32, i32, i32
  }
  func.func @transform_14(%arg0: i32) -> (i32, i32, i32) {
    %c0_i32 = arith.constant 0 : i32
    %c0_i32_0 = arith.constant 0 : i32
    %c0_i32_1 = arith.constant 0 : i32
    return %arg0, %c0_i32, %c0_i32_0 : i32, i32, i32
  }
  func.func @transform_15(%arg0: i32) -> (i32, i32, i32) {
    %c0_i32 = arith.constant 0 : i32
    %c0_i32_0 = arith.constant 0 : i32
    %c0_i32_1 = arith.constant 0 : i32
    return %arg0, %c0_i32, %c0_i32_0 : i32, i32, i32
  }
  func.func @transform_16(%arg0: i32) -> (i32, i32, i32) {
    %c0_i32 = arith.constant 0 : i32
    %c0_i32_0 = arith.constant 0 : i32
    %c0_i32_1 = arith.constant 0 : i32
    return %arg0, %c0_i32, %c0_i32_0 : i32, i32, i32
  }
  func.func @transform_17(%arg0: i32) -> (i32, i32, i32) {
    %c0_i32 = arith.constant 0 : i32
    %c0_i32_0 = arith.constant 0 : i32
    %c0_i32_1 = arith.constant 0 : i32
    return %arg0, %c0_i32, %c0_i32_0 : i32, i32, i32
  }
  func.func @transform_18(%arg0: i32) -> (i32, i32, i32) {
    %c0_i32 = arith.constant 0 : i32
    %c0_i32_0 = arith.constant 0 : i32
    %c0_i32_1 = arith.constant 0 : i32
    return %arg0, %c0_i32, %c0_i32_0 : i32, i32, i32
  }
  func.func @transform_19(%arg0: i32) -> (i32, i32, i32) {
    %c0_i32 = arith.constant 0 : i32
    %c0_i32_0 = arith.constant 0 : i32
    %c0_i32_1 = arith.constant 0 : i32
    return %arg0, %c0_i32, %c0_i32_0 : i32, i32, i32
  }
  func.func @transform_20(%arg0: i32) -> (i32, i32, i32) {
    %c0_i32 = arith.constant 0 : i32
    %c0_i32_0 = arith.constant 0 : i32
    %c0_i32_1 = arith.constant 0 : i32
    return %arg0, %c0_i32, %c0_i32_0 : i32, i32, i32
  }
  func.func @transform_21(%arg0: i32) -> (i32, i32, i32) {
    %c0_i32 = arith.constant 0 : i32
    %c0_i32_0 = arith.constant 0 : i32
    %c0_i32_1 = arith.constant 0 : i32
    return %arg0, %c0_i32, %c0_i32_0 : i32, i32, i32
  }
  func.func @transform_22(%arg0: i32) -> (i32, i32, i32) {
    %c0_i32 = arith.constant 0 : i32
    %c0_i32_0 = arith.constant 0 : i32
    %c0_i32_1 = arith.constant 0 : i32
    return %arg0, %c0_i32, %c0_i32_0 : i32, i32, i32
  }
  func.func @transform_23(%arg0: i32) -> (i32, i32, i32) {
    %c0_i32 = arith.constant 0 : i32
    %c0_i32_0 = arith.constant 0 : i32
    %c0_i32_1 = arith.constant 0 : i32
    return %arg0, %c0_i32, %c0_i32_0 : i32, i32, i32
  }
  func.func @transform_24(%arg0: i32) -> (i32, i32) {
    %c0_i32 = arith.constant 0 : i32
    %c0_i32_0 = arith.constant 0 : i32
    %c0_i32_1 = arith.constant 0 : i32
    return %c0_i32, %c0_i32_0 : i32, i32
  }
}

</mosaic_0001>

<bundles_post_ra>
// kernel: tpu_custom_call.1
= control target key start
LH: loop header
LB: loop body
LE: loop exit
PB: predicated region body
PF: predicated region fallthrough
CT: control target
= control target key end

     0   :  { %s3528_s0 = inlined_call_operand.vmem [shape: f32[16,32], index: 0, kind: input, shape index: {}]   ;;  %s3529_s1 = inlined_call_operand.hbm [shape: f32[16,32], index: 1, kind: input, shape index: {}]   ;;  %s3530_s2 = inlined_call_operand.hbm [shape: f32[16,64], index: 2, kind: input, shape index: {}]   ;;  %s3531_s3 = inlined_call_operand.hbm [shape: f32[32,64], index: 3, kind: input, shape index: {}]   ;;  %s3532_s4 = inlined_call_operand.hbm [shape: f32[16,64], index: 4, kind: input, shape index: {}]   ;;  %s3533_s5 = inlined_call_operand.vmem [shape: f32[64,16], index: 5, kind: input, shape index: {}]   ;;  %s3534_s6 = inlined_call_operand.vmem [shape: f32[64,32], index: 6, kind: input, shape index: {}]   ;;  %s3535_s7 = inlined_call_operand.vmem [shape: f32[64,64], index: 7, kind: input, shape index: {}]   ;;  %s3536_s8 = inlined_call_operand.vmem [shape: f32[3,32,32], index: 8, kind: input, shape index: {}]   ;;  %s3537_s9 = inlined_call_operand.vmem [shape: f32[3,32,32], index: 9, kind: input, shape index: {}]   ;;  %s3538_s10 = inlined_call_operand.vmem [shape: f32[3,32,32], index: 10, kind: input, shape index: {}]   ;;  %s3539_s11 = inlined_call_operand.hbm [shape: f32[3,32,32], index: 11, kind: input, shape index: {}]   ;;  %s3540_s12 = inlined_call_operand.hbm [shape: f32[3,32,64], index: 12, kind: input, shape index: {}]   ;;  %s3541_s13 = inlined_call_operand.vmem [shape: f32[3,64,32], index: 13, kind: input, shape index: {}]   ;;  %s3542_s14 = inlined_call_operand.vmem [shape: f32[3,1,32], index: 14, kind: input, shape index: {}]   ;;  %s3543_s15 = inlined_call_operand.vmem [shape: f32[3,1,32], index: 15, kind: input, shape index: {}]   ;;  %s3544_s16 = inlined_call_operand.vmem [shape: f32[3,1,32], index: 16, kind: input, shape index: {}]   ;;  %s3545_s17 = inlined_call_operand.vmem [shape: f32[3,1,32], index: 17, kind: input, shape index: {}]   ;;  %s3546_s18 = inlined_call_operand.vmem [shape: f32[3,1,64], index: 18, kind: input, shape index: {}]   ;;  %s3547_s19 = inlined_call_operand.hbm [shape: f32[3,1,32], index: 19, kind: input, shape index: {}]   ;;  %s3548_s20 = inlined_call_operand.hbm [shape: f32[3,1,32], index: 20, kind: input, shape index: {}]   ;;  %s3549_s21 = inlined_call_operand.hbm [shape: f32[3,1,32], index: 21, kind: input, shape index: {}]   ;;  %s3550_s22 = inlined_call_operand.hbm [shape: f32[3,1,32], index: 22, kind: input, shape index: {}]   ;;  %s3551_s23 = inlined_call_operand.hbm [shape: f32[3,1,32], index: 23, kind: input, shape index: {}]   ;;  %s3552_s24 = inlined_call_operand.hbm [shape: f32[16,32], index: 24, kind: output, shape index: {}]  }
   0x1   :  { %3567 = sst [smem:[#allocation29_spill]] %s3528_s0 }
   0x2   :  { %3568 = sst [smem:[#allocation30_spill]] %s3529_s1 }
   0x3   :  { %3569 = sst [smem:[#allocation31_spill]] %s3530_s2 }
   0x4   :  { %3570 = sst [smem:[#allocation32_spill]] %s3531_s3 }
   0x5   :  { %3571 = sst [smem:[#allocation33_spill]] %s3532_s4 }
   0x6   :  { %3572 = sst [smem:[#allocation34_spill]] %s3533_s5 }
   0x7   :  { %3573 = sst [smem:[#allocation35_spill]] %s3534_s6 }
   0x8   :  { %3574 = sst [smem:[#allocation36_spill]] %s3535_s7 }
   0x9   :  { %3575 = sst [smem:[#allocation37_spill]] %s3536_s8 }
   0xa   :  { %3576 = sst [smem:[#allocation38_spill]] %s3537_s9 }
   0xb   :  { %3577 = sst [smem:[#allocation39_spill]] %s3538_s10 }
   0xc   :  { %3578 = sst [smem:[#allocation40_spill]] %s3539_s11 }
   0xd   :  { %3579 = sst [smem:[#allocation41_spill]] %s3540_s12 }
   0xe   :  { %3580 = sst [smem:[#allocation42_spill]] %s3541_s13 }
   0xf   :  { %3581 = sst [smem:[#allocation43_spill]] %s3542_s14 }
  0x10   :  { %3582 = sst [smem:[#allocation44_spill]] %s3543_s15 }
  0x11   :  { %3583 = sst [smem:[#allocation45_spill]] %s3544_s16 }
  0x12   :  { %3584 = sst [smem:[#allocation46_spill]] %s3545_s17 }
  0x13   :  { %3585 = sst [smem:[#allocation47_spill]] %s3546_s18 }
  0x14   :  { %3586 = sst [smem:[#allocation48_spill]] %s3547_s19 }
  0x15   :  { %3587 = sst [smem:[#allocation49_spill]] %s3548_s20 }
  0x16   :  { %3588 = sst [smem:[#allocation50_spill]] %s3549_s21 }
  0x17   :  { %3589 = sst [smem:[#allocation51_spill]] %s3550_s22 }
  0x18   :  { %3590 = sst [smem:[#allocation52_spill]] %s3552_s24 }
  0x19   :  { %29 = vsyncpa [#allocation4], 0 }
  0x1a   :  { %30 = vsyncpa [#allocation7], 0 }
  0x1b   :  { %31 = vsyncpa [#allocation10], 0 }
  0x1c   :  { %32 = vsyncpa [#allocation5], 0  ;;  %s2985_s5 = smov 0   ;;  %s2987_s26 = smov 0  }
  0x1d   :  { %s2989_s27 = smov 0   ;;  %s2991_s28 = smov 0  }
  0x1e LB: > { %3591 = sst [smem:[#allocation24_spill]] %s2840_s26  ;;  %s3004_s6 = sadd.s32 4294967295, %s2848_s28   ;;  %s2848_s28 = sphi %s2991_s28, %s3636_s28   ;;  %s2844_s27 = sphi %s2989_s27, %s3639_s27   ;;  %s2840_s26 = sphi %s2987_s26, %s3638_s26   ;;  %s2836_s5 = sphi %s2985_s5, %s3637_s5  }
  0x1f   : > { %3592 = sst [smem:[#allocation25_spill]] %s2844_s27  ;;  %s3007_s2 = sadd.s32 1, %s2848_s28  }
  0x20   : > { %3593 = sst [smem:[#allocation26_spill]] %s3007_s2  ;;  %s288_s29 = ssub.s32 %s2848_s28, %s3007_s2 }
  0x21   : > { %s291_s0 = sadd.s32 1, %s2844_s27  ;;  %p289_p0 = scmp.eq.s32.totalorder %s288_s29, 0 }
  0x22   : > { %p298_p1 = scmp.ne.s32.totalorder %s2844_s27, %s2840_s26  ;;  %p299_p2 = scmp.eq.s32.totalorder %s2848_s28, 0 }
  0x23   : > { %p304_p3 = scmp.ne.s32.totalorder %s2840_s26, %s2836_s5  ;;  %p305_p5 = scmp.eq.s32.totalorder %s3004_s6, 0 }
  0x24   : > { %s3017_s7 = scalar_select %p289_p0, %s2844_s27, %s291_s0  }
  0x25   : > { %p3019_p4 = por %p299_p2, %p298_p1  ;;  %p2208_p6 = scmp.ge.s32.totalorder %s2848_s28, 1 }
  0x26   : > { %3594 = sst [smem:[#allocation27_spill]] %s3017_s7  ;;  %p648_p7 = scmp.lt.s32.totalorder %s2848_s28, 4 }
  0x27   : > { %p3028_p8 = por %p305_p5, %p304_p3  ;;  %p2209_p9 = scmp.ne.s32.totalorder %s3004_s6, 0 }
  0x28   : > { %p3033_p10 = pnand %p2208_p6, %p648_p7  ;;  %s3599_s1 = sld [smem:[#allocation30_spill]] }
  0x29   : > { %s3596_s3 = scalar_select %p3028_p8, 1, 0 }
  0x2a   : > { %p2315_p11 = pneg %p3033_p10  ;;  %s2850_s29 = smov [#allocation3]  }
  0x2b   : > { %3597 = sst [smem:[#allocation28_spill]] %s3596_s3  ;;  %s664_s0 = sshll.u32 %s2850_s29, 4  ;;  %s665_s0 = int_to_ptr.vmem [resolvable:$true] %s664_s0 }
  0x2c   : > { %p3044_p12 = pnand %p2315_p11, %p305_p5  ;;  %p2354_p13 = scmp.lt.s32.totalorder %s2848_s28, 3 }
  0x2d   : > { %s753_s2 = sand.u32 1, %s2848_s28   ;;  %s3559_s24 = smov 128  }
  0x2e   : > { %s662_s5 = sshll.u32 %s3599_s1, 4  ;;  %s3565_s18 = smov 8   ;;  %s663_s5 = int_to_ptr.hbm [resolvable:$true] %s662_s5 }
  0x2f   : > { %2318 = dma.hbm_to_vmem [thread:$0]  (!%p3044_p12), %s663_s5, 256, %s665_s0, [#allocation4], %s3559_s24, %s3559_s24, %s3565_s18  }
  0x30   : > { %p3057_p0 = pnand %p2354_p13, %p3019_p4  ;;  %s3062_s4 = sand.u32 1, %s2844_s27  }
  0x31   : > { %s2271_s1 = sshll.u32 %s2848_s28, 5  ;;  %s2214_s29 = sshll.u32 %s3062_s4, 5 }
  0x32   : > { %s3602_s11 = sld [smem:[#allocation40_spill]]  ;;  %s757_s13 = scalar_lea.vmem [#allocation11], %s2214_s29 }
  0x33   : > { %s765_s10 = sshll.u32 %s757_s13, 4  ;;  %s3069_s30 = scalar_lea.sflag [#allocation4], %s753_s2  ;;  %s766_s10 = int_to_ptr.vmem [resolvable:$true] %s765_s10 }
  0x34   : > { %p3073_p2 = pneg %p3057_p0 }
  0x38   : > { %s762_s15 = scalar_lea.hbm %s3602_s11, %s2271_s1  ;;  %s2477_s13 = scalar_lea.hbm %s3602_s11, 96 }
  0x39   : > { %s763_s14 = sshll.u32 %s762_s15, 4  ;;  %s764_s14 = int_to_ptr.hbm [resolvable:$true] %s763_s14 }
  0x3a   : > { %s2470_s5 = sshra.s32 %s764_s14, 4  ;;  %s2471_s5 = int_to_ptr.hbm [resolvable:$true] %s2470_s5 }
  0x3b   : > { %s2472_s0 = scalar_lea.hbm %s2471_s5, 32  ;;  %p2478_p6 = scmp.lt.s32.totalorder %s2471_s5, %s3602_s11 }
  0x3c   : > { %p2473_p1 = scmp.ne.s32.totalorder %s2471_s5, %s2472_s0  ;;  %p2479_p7 = scmp.lt.s32.totalorder %s2477_s13, %s2472_s0 }
  0x3e   : > { %p2475_p3 = pnand %p3073_p2, %p2473_p1  ;;  %p2480_p11 = por %p2479_p7, %p2478_p6 }
  0x40   : > { %p2476_p4 = pneg %p2475_p3 }
  0x42   : > { %p2481_p13 = pnand %p2480_p11, %p2476_p4 }
  0x44   : > { %2484 = shalt.err (!%p2481_p13)
}
  0x45   : > { %s3604_s27 = smov 128   ;;  %s3605_s12 = sld [smem:[#allocation41_spill]] }
  0x46   : > { %2331 = dma.hbm_to_vmem [thread:$0]  (!%p3057_p0), %s764_s14, 512, %s766_s10, %s3069_s30, %s3604_s27, %s3604_s27, %s3565_s18  }
  0x47   : > { %s779_s26 = scalar_lea.vmem [#allocation12], %s2214_s29 }
  0x48   : > { %s787_s17 = sshll.u32 %s779_s26, 4  ;;  %s788_s17 = int_to_ptr.vmem [resolvable:$true] %s787_s17 }
  0x4b   : > { %s784_s15 = scalar_lea.hbm %s3605_s12, %s2271_s1  ;;  %s2507_s10 = scalar_lea.hbm %s3605_s12, 96 }
  0x4c   : > { %s785_s16 = sshll.u32 %s784_s15, 4  ;;  %s786_s16 = int_to_ptr.hbm [resolvable:$true] %s785_s16 }
  0x4d   : > { %s2500_s5 = sshra.s32 %s786_s16, 4  ;;  %s2501_s5 = int_to_ptr.hbm [resolvable:$true] %s2500_s5 }
  0x4e   : > { %s2502_s0 = scalar_lea.hbm %s2501_s5, 32  ;;  %p2508_p6 = scmp.lt.s32.totalorder %s2501_s5, %s3605_s12 }
  0x4f   : > { %p2503_p1 = scmp.ne.s32.totalorder %s2501_s5, %s2502_s0  ;;  %p2509_p7 = scmp.lt.s32.totalorder %s2507_s10, %s2502_s0 }
  0x51   : > { %p2505_p3 = pnand %p2503_p1, %p3073_p2  ;;  %p2510_p11 = por %p2509_p7, %p2508_p6 }
  0x53   : > { %p2506_p4 = pneg %p2505_p3 }
  0x55   : > { %p2511_p13 = pnand %p2510_p11, %p2506_p4 }
  0x57   : > { %2514 = shalt.err (!%p2511_p13)
}
  0x58   : > { %s3606_s9 = smov 8   ;;  %s3607_s19 = sld [smem:[#allocation48_spill]] }
  0x59   : > { %2334 = dma.hbm_to_vmem [thread:$0]  (!%p3057_p0), %s786_s16, 512, %s788_s17, %s3069_s30, %s3604_s27, %s3604_s27, %s3606_s9  }
  0x5a   : > { %s838_s29 = scalar_lea.vmem [#allocation13], %s3062_s4 }
  0x5b   : > { %s845_s15 = sshll.u32 %s838_s29, 4  ;;  %s846_s15 = int_to_ptr.vmem [resolvable:$true] %s845_s15 }
  0x5e   : > { %s841_s1 = scalar_lea.hbm %s3607_s19, %s2848_s28  ;;  %s2537_s16 = scalar_lea.hbm %s3607_s19, 3 }
  0x5f   : > { %s843_s18 = sshll.u32 %s841_s1, 4  ;;  %s844_s18 = int_to_ptr.hbm [resolvable:$true] %s843_s18 }
  0x60   : > { %s2530_s5 = sshra.s32 %s844_s18, 4  ;;  %s2531_s5 = int_to_ptr.hbm [resolvable:$true] %s2530_s5 }
  0x61   : > { %s2532_s0 = scalar_lea.hbm %s2531_s5, 1  ;;  %p2538_p6 = scmp.lt.s32.totalorder %s2531_s5, %s3607_s19 }
  0x62   : > { %p2533_p1 = scmp.ne.s32.totalorder %s2531_s5, %s2532_s0  ;;  %p2539_p7 = scmp.lt.s32.totalorder %s2537_s16, %s2532_s0 }
  0x64   : > { %p2535_p3 = pnand %p2533_p1, %p3073_p2  ;;  %p2540_p11 = por %p2539_p7, %p2538_p6 }
  0x66   : > { %p2536_p4 = pneg %p2535_p3 }
  0x68   : > { %p2541_p13 = pnand %p2540_p11, %p2536_p4 }
  0x6a   : > { %2544 = shalt.err (!%p2541_p13)
}
  0x6b   : > { %2337 = dma.hbm_to_vmem [thread:$0]  (!%p3057_p0), %s844_s18, 16, %s846_s15, %s3069_s30  }
  0x6c   : > { %s3608_s20 = sld [smem:[#allocation49_spill]]  ;;  %s855_s29 = scalar_lea.vmem [#allocation14], %s3062_s4 }
  0x6d   : > { %s862_s13 = sshll.u32 %s855_s29, 4  ;;  %s863_s13 = int_to_ptr.vmem [resolvable:$true] %s862_s13 }
  0x72   : > { %s858_s3 = scalar_lea.hbm %s3608_s20, %s2848_s28  ;;  %s2567_s18 = scalar_lea.hbm %s3608_s20, 3 }
  0x73   : > { %s860_s1 = sshll.u32 %s858_s3, 4  ;;  %s861_s1 = int_to_ptr.hbm [resolvable:$true] %s860_s1 }
  0x74   : > { %s2560_s5 = sshra.s32 %s861_s1, 4  ;;  %s2561_s5 = int_to_ptr.hbm [resolvable:$true] %s2560_s5 }
  0x75   : > { %s2562_s0 = scalar_lea.hbm %s2561_s5, 1  ;;  %p2568_p6 = scmp.lt.s32.totalorder %s2561_s5, %s3608_s20 }
  0x76   : > { %p2563_p1 = scmp.ne.s32.totalorder %s2561_s5, %s2562_s0  ;;  %p2569_p7 = scmp.lt.s32.totalorder %s2567_s18, %s2562_s0 }
  0x78   : > { %p2565_p3 = pnand %p2563_p1, %p3073_p2  ;;  %p2570_p11 = por %p2569_p7, %p2568_p6 }
  0x7a   : > { %p2566_p4 = pneg %p2565_p3 }
  0x7c   : > { %p2571_p13 = pnand %p2570_p11, %p2566_p4 }
  0x7e   : > { %2574 = shalt.err (!%p2571_p13)
}
  0x7f   : > { %2340 = dma.hbm_to_vmem [thread:$0]  (!%p3057_p0), %s861_s1, 16, %s863_s13, %s3069_s30  }
  0x80   : > { %s3609_s21 = sld [smem:[#allocation50_spill]]  ;;  %s872_s29 = scalar_lea.vmem [#allocation15], %s3062_s4 }
  0x81   : > { %s879_s2 = sshll.u32 %s872_s29, 4  ;;  %s880_s2 = int_to_ptr.vmem [resolvable:$true] %s879_s2 }
  0x86   : > { %s875_s26 = scalar_lea.hbm %s3609_s21, %s2848_s28  ;;  %s2597_s1 = scalar_lea.hbm %s3609_s21, 3 }
  0x87   : > { %s877_s3 = sshll.u32 %s875_s26, 4  ;;  %s878_s3 = int_to_ptr.hbm [resolvable:$true] %s877_s3 }
  0x88   : > { %s2590_s5 = sshra.s32 %s878_s3, 4  ;;  %s2591_s5 = int_to_ptr.hbm [resolvable:$true] %s2590_s5 }
  0x89   : > { %s2592_s0 = scalar_lea.hbm %s2591_s5, 1  ;;  %p2598_p6 = scmp.lt.s32.totalorder %s2591_s5, %s3609_s21 }
  0x8a   : > { %p2593_p1 = scmp.ne.s32.totalorder %s2591_s5, %s2592_s0  ;;  %p2599_p7 = scmp.lt.s32.totalorder %s2597_s1, %s2592_s0 }
  0x8c   : > { %p2595_p3 = pnand %p2593_p1, %p3073_p2  ;;  %p2600_p11 = por %p2599_p7, %p2598_p6 }
  0x8e   : > { %p2596_p4 = pneg %p2595_p3 }
  0x90   : > { %p2601_p13 = pnand %p2600_p11, %p2596_p4 }
  0x92   : > { %2604 = shalt.err (!%p2601_p13)
}
  0x93   : > { %2343 = dma.hbm_to_vmem [thread:$0]  (!%p3057_p0), %s878_s3, 16, %s880_s2, %s3069_s30  }
  0x94   : > { %s3610_s14 = sld [smem:[#allocation31_spill]]  ;;  %s2853_s29 = smov [#allocation6]  }
  0x95   : > { %s678_s16 = sshll.u32 %s2853_s29, 4  ;;  %s3611_s22 = sld [smem:[#allocation51_spill]]  ;;  %s679_s16 = int_to_ptr.vmem [resolvable:$true] %s678_s16 }
  0x96   : > { %s889_s1 = scalar_lea.vmem [#allocation16], %s3062_s4  ;;  %s3612_s17 = sld [smem:[#allocation32_spill]] }
  0x97   : > { %s896_s3 = sshll.u32 %s889_s1, 4  ;;  %s897_s3 = int_to_ptr.vmem [resolvable:$true] %s896_s3 }
  0x9a   : > { %s676_s26 = sshll.u32 %s3610_s14, 4  ;;  %s677_s26 = int_to_ptr.hbm [resolvable:$true] %s676_s26 }
  0x9b   : > { %2321 = dma.hbm_to_vmem [thread:$0]  (!%p3044_p12), %s677_s26, 256, %s679_s16, [#allocation7], %s3604_s27, %s3604_s27, %s3606_s9  }
  0x9c   : > { %s892_s18 = scalar_lea.hbm %s3611_s22, %s2848_s28  ;;  %s690_s10 = sshll.u32 %s3612_s17, 4  ;;  %s691_s10 = int_to_ptr.hbm [resolvable:$true] %s690_s10 }
  0x9d   : > { %s894_s2 = sshll.u32 %s892_s18, 4  ;;  %s2657_s5 = scalar_lea.hbm %s3611_s22, 3  ;;  %s895_s2 = int_to_ptr.hbm [resolvable:$true] %s894_s2 }
  0x9e   : > { %s2650_s14 = sshra.s32 %s895_s2, 4  ;;  %s2651_s14 = int_to_ptr.hbm [resolvable:$true] %s2650_s14 }
  0x9f   : > { %s2652_s29 = scalar_lea.hbm %s2651_s14, 1  ;;  %p2658_p6 = scmp.lt.s32.totalorder %s2651_s14, %s3611_s22 }
  0xa0   : > { %p2653_p1 = scmp.ne.s32.totalorder %s2651_s14, %s2652_s29  ;;  %p2659_p7 = scmp.lt.s32.totalorder %s2657_s5, %s2652_s29 }
  0xa2   : > { %p2655_p3 = pnand %p2653_p1, %p3073_p2  ;;  %p2660_p11 = por %p2659_p7, %p2658_p6 }
  0xa4   : > { %p2656_p4 = pneg %p2655_p3 }
  0xa6   : > { %p2661_p13 = pnand %p2660_p11, %p2656_p4 }
  0xa8   : > { %2664 = shalt.err (!%p2661_p13)
}
  0xa9   : > { %2346 = dma.hbm_to_vmem [thread:$0]  (!%p3057_p0), %s895_s2, 16, %s897_s3, %s3069_s30  }
  0xaa   : > { %s2854_s18 = smov [#allocation8]   ;;  %s3613_s26 = sld [smem:[#allocation33_spill]] }
  0xab   : > { %s692_s13 = sshll.u32 %s2854_s18, 4  ;;  %s2855_s14 = smov [#allocation9]   ;;  %s693_s13 = int_to_ptr.vmem [resolvable:$true] %s692_s13 }
  0xac   : > { %2324 = dma.hbm_to_vmem [thread:$0]  (!%p3044_p12), %s691_s10, 512, %s693_s13, [#allocation7], %s3604_s27, %s3604_s27, %s3606_s9  }
  0xad   : > { %s706_s29 = sshll.u32 %s2855_s14, 4  ;;  %s909_s3 = scalar_lea.hbm %s3551_s23, %s2848_s28  ;;  %s707_s29 = int_to_ptr.vmem [resolvable:$true] %s706_s29 }
  0xae   : > { %s911_s2 = sshll.u32 %s909_s3, 4  ;;  %s906_s1 = scalar_lea.vmem [#allocation17], %s3062_s4  ;;  %s912_s2 = int_to_ptr.hbm [resolvable:$true] %s911_s2 }
  0xaf   : > { %s913_s18 = sshll.u32 %s906_s1, 4  ;;  %s2740_s15 = sshra.s32 %s912_s2, 4  ;;  %s914_s18 = int_to_ptr.vmem [resolvable:$true] %s913_s18  ;;  %s2741_s15 = int_to_ptr.hbm [resolvable:$true] %s2740_s15 }
  0xb0   : > { %s704_s16 = sshll.u32 %s3613_s26, 4  ;;  %s2742_s10 = scalar_lea.hbm %s2741_s15, 1  ;;  %s705_s16 = int_to_ptr.hbm [resolvable:$true] %s704_s16 }
  0xb1   : > { %2327 = dma.hbm_to_vmem [thread:$0]  (!%p3044_p12), %s705_s16, 256, %s707_s29, [#allocation10], %s3604_s27, %s3604_s27, %s3606_s9  }
  0xb2   : > { %p2743_p1 = scmp.ne.s32.totalorder %s2741_s15, %s2742_s10  ;;  %s2747_s17 = scalar_lea.hbm %s3551_s23, 3 }
  0xb3   : > { %p2748_p6 = scmp.lt.s32.totalorder %s2741_s15, %s3551_s23  ;;  %p2749_p12 = scmp.lt.s32.totalorder %s2747_s17, %s2742_s10 }
  0xb4   : > { %p2745_p3 = pnand %p2743_p1, %p3073_p2 }
  0xb5   : > { %p2750_p7 = por %p2749_p12, %p2748_p6 }
  0xb6   : > { %p2746_p4 = pneg %p2745_p3 }
  0xb8   : > { %p2751_p11 = pnand %p2750_p7, %p2746_p4 }
  0xba   : > { %2754 = shalt.err (!%p2751_p11)
}
  0xbb   : > { %2349 = dma.hbm_to_vmem [thread:$0]  (!%p3057_p0), %s912_s2, 16, %s914_s18, %s3069_s30  }
  0xbc   : > { %922 = sbr.rel (%p3033_p10) target bundleno = 2235 (0x8bb), region = 116 }
  0xc1   : > { %2815 = dma.done.wait (%p305_p5), [#allocation4], 256  }
  0xc2   : > { %2817 = vsyncadd (%p305_p5), [#allocation4], 4294967040 }
  0xc3   : > { %2819 = dma.done.wait (%p305_p5), [#allocation7], 768  }
  0xc4   : > { %2821 = vsyncadd (%p305_p5), [#allocation7], 4294966528 }
  0xc5   : > { %2823 = dma.done.wait (%p305_p5), [#allocation10], 256  }
  0xc6   : > { %2825 = vsyncadd (%p305_p5), [#allocation10], 4294967040  ;;  %s3614_s24 = sld [smem:[#allocation24_spill]]  ;;  %s944_s25 = sand.u32 1, %s3004_s6  }
  0xc7   : > { %s945_s30 = scalar_lea.sflag [#allocation4], %s944_s25 }
  0xcc   : > { %s3228_s8 = sand.u32 1, %s3614_s24  }
  0xcd   : > { %s2225_s4 = sshll.u32 %s3228_s8, 5 }
  0xce   : > { %s3231_s9 = scalar_lea.vmem [#allocation11], %s2225_s4 }
  0xcf   : > { %2827 = dma.done.wait (%p3028_p8), %s945_s30, 1104  }
  0xd0   : > { %2829 = vsyncadd (%p3028_p8), %s945_s30, 4294966192  ;;  %p1124_p5 = scmp.lt.s32.totalorder %s3004_s6, 2  ;;  %s3616_s3 = sld [smem:[#allocation37_spill]] }
  0xd1   : > { %s3617_s15 = sld [smem:[#allocation38_spill]]  ;;  %s967_s11 = scalar_lea.vmem [#allocation13], %s3228_s8 }
  0xd2   : > { %s3239_s16 = scalar_select %p1124_p5, %s3004_s6, 2 }
  0xd3   : > { %s3618_s17 = sld [smem:[#allocation39_spill]]  ;;  %s976_s12 = scalar_lea.vmem [#allocation14], %s3228_s8 }
  0xd4   : > { %s2273_s14 = sshll.u32 %s3239_s16, 5  ;;  %s2276_s29 = sshll.u32 %s3239_s16, 6 }
  0xd5   : > { %s3619_s27 = sld [smem:[#allocation42_spill]]  ;;  %s985_s30 = scalar_lea.vmem [#allocation15], %s3228_s8 }
  0xd6   : > { %s1128_s2 = scalar_lea.vmem %s3616_s3, %s2273_s14  ;;  %s3621_s19 = sld [smem:[#allocation44_spill]] }
  0xd7   : > { %s3249_s10 = scalar_lea.vmem %s3617_s15, %s2273_s14  ;;  %s3622_s20 = sld [smem:[#allocation45_spill]] }
  0xd8   : > { %s3623_s28 = sld [smem:[#allocation46_spill]]  ;;  %s994_s5 = scalar_lea.vmem [#allocation16], %s3228_s8 }
  0xd9   : > { %s3254_s7 = scalar_lea.vmem %s3618_s17, %s2273_s14  ;;  %s1003_s0 = scalar_lea.vmem [#allocation17], %s3228_s8 }
  0xda   : > { %s3625_s3 = sld [smem:[#allocation29_spill]] (!%p2209_p9) }
  0xdb   : > { %s3259_s25 = scalar_lea.vmem %s3619_s27, %s2276_s29  ;;  %s3624_s29 = sld [smem:[#allocation47_spill]] }
  0xdc   : > { %s1149_s1 = scalar_lea.vmem %s3621_s19, %s3239_s16  ;;  %s3281_s27 = scalar_lea.vmem [#allocation12], %s2225_s4 }
  0xdd   : > { %s1152_s21 = scalar_lea.vmem %s3622_s20, %s3239_s16  ;;  %1162 = sbr.rel (%p2209_p9) target bundleno = 229 (0xe5), region = 164 }
  0xde   : > { %s1155_s17 = scalar_lea.vmem %s3623_s28, %s3239_s16 }
  0xe1   : > { %s1158_s24 = scalar_lea.vmem %s3624_s29, %s3239_s16 }
  0xe2   : > { %v1163_v0 = vld [vmem:[%s3625_s3] sm:$0xff]  ;;  %vm1165_vm0 = vcmask 261120   ;;  %v1164_v1 = vld [vmem:[%s3625_s3 + $0x8] sm:$0xff] }
  0xe3   : > { %1166 = vst.msk [vmem:[#allocation2] sm:$0xff] %vm1165_vm0, %v1163_v0 }
  0xe4   : > { %1167 = vst.msk [vmem:[#allocation2 + $0x8] sm:$0xff] %vm1165_vm0, %v1164_v1 }
  0xe5 PF: > { %v1177_v2 = vld [vmem:[%s1128_s2 + $0x18] sm:$0xff]  ;;  %v1176_v3 = vld [vmem:[%s1128_s2 + $0x10] sm:$0xff]  ;;  %v1175_v6 = vld [vmem:[%s1128_s2 + $0x8] sm:$0xff]  ;;  %vm1215_vm1 = vcmask 261120   ;;  %vm1337_vm2 = vcmask 130048   ;;  %s3630_s20 = sld [smem:[#allocation34_spill]] }
  0xe6   : > { %2277 = vmatpush.msra.mxu1 %v1177_v2  ;;  %v1171_v5 = vld [vmem:[#allocation3 + $0x8] sm:$0xff]  ;;  %1234 = vmatpush.msra.mxu0 %v1177_v2  ;;  %v1174_v7 = vld [vmem:[%s1128_s2] sm:$0xff]  ;;  %v1170_v9 = vld [vmem:[#allocation3] sm:$0xff]  ;;  %vm1422_vm3 = vcmask 523264   ;;  %p2266_p8 = scmp.ne.s32.totalorder %s3004_s6, 2 }
  0xe7   : > { %v1181_v11 = vld [vmem:[%s3249_s10 + $0x18] sm:$0xff]  ;;  %v1180_v13 = vld [vmem:[%s3249_s10 + $0x10] sm:$0xff]  ;;  %v1179_v14 = vld [vmem:[%s3249_s10 + $0x8] sm:$0xff] }
  0xe8   : > { %2278 = vmatpush.msra.mxu1 %v1176_v3  ;;  %1235 = vmatpush.msra.mxu0 %v1176_v3  ;;  %v1178_v15 = vld [vmem:[%s3249_s10] sm:$0xff]  ;;  %v1304_v16 = vld [vmem:[#allocation6 + $0x8] sm:$0xff]  ;;  %v1185_v28 = vld [vmem:[%s3254_s7 + $0x18] sm:$0xff] }
  0xe9   : > { %v1303_v17 = vld [vmem:[#allocation6] sm:$0xff]  ;;  %1364 = vmatpush.msra.mxu3 %v1304_v16  ;;  %v1184_v29 = vld [vmem:[%s3254_s7 + $0x10] sm:$0xff]  ;;  %v1183_v30 = vld [vmem:[%s3254_s7 + $0x8] sm:$0xff] }
  0xea   : > { %v3298_v8 = vld [vmem:[#allocation2] sm:$0xff]  ;;  %2279 = vmatpush.msra.mxu1 %v1175_v6  ;;  %1236 = vmatpush.msra.mxu0 %v1175_v6  ;;  %v1382_v35 = vld [vmem:[#allocation8 + $0x18] sm:$0xff]  ;;  %v1380_v39 = vld [vmem:[#allocation8 + $0x8] sm:$0xff] }
  0xeb   : > { %v3296_v4 = vld [vmem:[#allocation2 + $0x8] sm:$0xff]  ;;  %v1172_v12 = vadd.f32 %v1170_v9, %v3298_v8  ;;  %1365 = vmatpush.msra.mxu3 %v1303_v17  ;;  %v2405_v19 = vld [vmem:[%s1149_s1] ss:$0 sm:$0xff]  ;;  %s3627_s1 = sld [smem:[#allocation43_spill]]  ;;  %v1379_v43 = vld [vmem:[#allocation8] sm:$0xff] }
  0xec   : > { %v1173_v10 = vadd.f32 %v1171_v5, %v3296_v4  ;;  %2280 = vmatpush.msra.mxu1 %v1174_v7  ;;  %1237 = vmatpush.msra.mxu0 %v1174_v7  ;;  %v1182_v31 = vld [vmem:[%s3254_s7] sm:$0xff]  ;;  %v1505_v54 = vld [vmem:[%s3630_s20 + $0x8] sm:$0xff]  ;;  %v1506_v55 = vld [vmem:[%s3630_s20 + $0x10] sm:$0xff] }
  0xed   : > { %2236 = vmatmul.msk.f32.vlgmr.msra.gmra.mxu0 %vm1215_vm1, %v1172_v12  ;;  %v1381_v36 = vld [vmem:[#allocation8 + $0x10] sm:$0xff]  ;;  %v1507_v56 = vld [vmem:[%s3630_s20 + $0x18] sm:$0xff]  ;;  %v1509_v60 = vld [vmem:[%s3630_s20 + $0x28] sm:$0xff] }
  0xee   : > { %2237 = vmatmul.msk.f32.vlgmr.msra.gmra.mxu1 %vm1215_vm1, %v1173_v10  ;;  %1292 = vmatpush.msrb.mxu0 %v1185_v28  ;;  %v2406_v49 = vld [vmem:[%s1152_s21] ss:$0 sm:$0xff]  ;;  %v1418_v62 = vld [vmem:[#allocation9] sm:$0xff]  ;;  %v1419_v5 = vld [vmem:[#allocation9 + $0x8] sm:$0xff]  ;;  %s3632_s21 = sld [smem:[#allocation35_spill]] }
  0xef   : > { %1260 = vmatpush.msrb.mxu1 %v1181_v11  ;;  %v1504_v53 = vld [vmem:[%s3630_s20] sm:$0xff]  ;;  %v1510_v2 = vld [vmem:[%s3630_s20 + $0x30] sm:$0xff] }
  0xf0   : > { %1293 = vmatpush.msrb.mxu0 %v1184_v29  ;;  %v1508_v59 = vld [vmem:[%s3630_s20 + $0x20] sm:$0xff] }
  0xf1   : > { %1261 = vmatpush.msrb.mxu1 %v1180_v13  ;;  %s3628_s13 = scalar_lea.vmem %s3627_s1, %s3239_s16  ;;  %s3631_s1 = sld [smem:[#allocation36_spill]] }
  0xf2   : > { %1294 = vmatpush.msrb.mxu0 %v1183_v30  ;;  %v2404_v42 = vld [vmem:[%s3628_s13] ss:$0 sm:$0xff] }
  0xf3   : > { %1262 = vmatpush.msrb.mxu1 %v1179_v14 }
  0xf4   : > { %1295 = vmatpush.msrb.mxu0 %v1182_v31 }
  0xf5   : > { %1263 = vmatpush.msrb.mxu1 %v1178_v15  ;;  %2240 = vmatmul.msk.f32.vlgmr.msrb.gmra.mxu0 %vm1215_vm1, %v3298_v8 }
  0xf6   : > { %2238 = vmatmul.msk.f32.vlgmr.msrb.gmra.mxu1 %vm1215_vm1, %v1172_v12 }
  0xf7   : > { %v1442_v57 = vld [vmem:[%s3631_s1 + $0x38] sm:$0xff]  ;;  %v1441_v58 = vld [vmem:[%s3631_s1 + $0x30] sm:$0xff]  ;;  %v1440_v11 = vld [vmem:[%s3631_s1 + $0x28] sm:$0xff] }
  0xf8   : > { %1457 = vmatpush.msra.mxu1 %v1442_v57  ;;  %v1439_v12 = vld [vmem:[%s3631_s1 + $0x20] sm:$0xff]  ;;  %v1438_v13 = vld [vmem:[%s3631_s1 + $0x18] sm:$0xff]  ;;  %v1437_v14 = vld [vmem:[%s3631_s1 + $0x10] sm:$0xff] }
  0xf9   : > { %v1436_v16 = vld [vmem:[%s3631_s1 + $0x8] sm:$0xff]  ;;  %v1435_v17 = vld [vmem:[%s3631_s1] sm:$0xff] }
  0xfa   : > { %1458 = vmatpush.msra.mxu1 %v1441_v58 }
  0xfc   : > { %1459 = vmatpush.msra.mxu1 %v1440_v11 }
  0xfd   : > { %2241 = vmatmul.msk.f32.gmra.mxu0 %vm1215_vm1, %v3296_v4 }
  0xfe   : > { %2239 = vmatmul.msk.f32.gmra.mxu1 %vm1215_vm1, %v1173_v10  ;;  %v1511_v10 = vld [vmem:[%s3630_s20 + $0x38] sm:$0xff] }
  0xff   : > { %1460 = vmatpush.msra.mxu1 %v1439_v12 }
 0x101   : > { %1461 = vmatpush.msra.mxu1 %v1438_v13 }
 0x103   : > { %1462 = vmatpush.msra.mxu1 %v1437_v14 }
 0x105   : > { %1463 = vmatpush.msra.mxu1 %v1436_v16  ;;  %v1186_v16 = vld [vmem:[%s3231_s9] sm:$0xff] }
 0x107   : > { %1464 = vmatpush.msra.mxu1 %v1435_v17 }
 0x16a   : > { %v1239_v41 = vpop.f32.mrf.mxu0 }
 0x16b   : > { %v1242_v18 = vpop.f32.mrf.mxu1  ;;  %v1240_v45 = vadd.f32 %v2404_v42, %v1239_v41 }
 0x16c   : > { %v1243_v47 = vadd.f32 %v2404_v42, %v1242_v18  ;;  %v1579_v42 = vld [vmem:[%s3632_s21 + $0x10] sm:$0xff] }
 0x172   : > { %v1297_v48 = vpop.f32.mrf.mxu0 }
 0x173   : > { %v1265_v20 = vpop.f32.mrf.mxu1  ;;  %v1298_v51 = vadd.f32 %v2406_v49, %v1297_v48 }
 0x174   : > { %v1266_v21 = vadd.f32 %v2405_v19, %v1265_v20 }
 0x176   : > { %1305 = vxpose.xlu0.b32.start [1/2] (short) (narrow) %v1266_v21, 32 }
 0x17a   : > { %v1300_v50 = vpop.f32.mrf.mxu0 }
 0x17b   : > { %v1268_v22 = vpop.f32.mrf.mxu1  ;;  %v1301_v52 = vadd.f32 %v2406_v49, %v1300_v50  ;;  %v1189_v49 = vld [vmem:[%s3231_s9 + $0x18] sm:$0xff]  ;;  %v1188_v50 = vld [vmem:[%s3231_s9 + $0x10] sm:$0xff] }
 0x17c   : > { %v1269_v23 = vadd.f32 %v2405_v19, %v1268_v22 }
 0x17d   : > { %1550 = vmatpush.msra.mxu2 %v1301_v52  ;;  %v1187_v52 = vld [vmem:[%s3231_s9 + $0x8] sm:$0xff] }
 0x17e   : > { %1306 = vxpose.xlu0.b32.end [2/2] (short) (narrow) %v1269_v23, 32 }
 0x17f   : > { %1551 = vmatpush.msra.mxu2 %v1298_v51 }
 0x180   : > { %2250 = vmatmul.msk.f32.vlgmr.msra.gmra.mxu2 %vm1337_vm2, %v1504_v53 }
 0x188   : > { %2251 = vmatmul.msk.f32.gmra.mxu2 %vm1337_vm2, %v1505_v54 }
 0x190   : > { %2252 = vmatmul.msk.f32.gmra.mxu2 %vm1337_vm2, %v1506_v55 }
 0x198   : > { %2253 = vmatmul.msk.f32.gmra.mxu2 %vm1337_vm2, %v1507_v56 }
 0x1a0   : > { %2254 = vmatmul.msk.f32.gmra.mxu2 %vm1337_vm2, %v1508_v59 }
 0x1a8   : > { %2255 = vmatmul.msk.f32.gmra.mxu2 %vm1337_vm2, %v1509_v60 }
 0x1b0   : > { %2256 = vmatmul.msk.f32.gmra.mxu2 %vm1337_vm2, %v1510_v2 }
 0x1b8   : > { %2257 = vmatmul.msk.f32.gmra.mxu2 %vm1337_vm2, %v1511_v10 }
 0x203   : > { %v1553_v15 = vpop.f32.mrf.mxu2 }
 0x20b   : > { %v1556_v18 = vpop.f32.mrf.mxu2 }
 0x213   : > { %v1559_v19 = vpop.f32.mrf.mxu2 }
 0x21a   : > { %v1321_v24 = vpop.trf.xlu0 }
 0x21b   : > { %2242 = vmatmul.msk.f32.vlgmr.msra.gmra.mxu3 %vm1337_vm2, %v1321_v24  ;;  %v1562_v20 = vpop.f32.mrf.mxu2 }
 0x222   : > { %v1322_v25 = vpop.trf.xlu0 }
 0x223   : > { %2243 = vmatmul.msk.f32.gmra.mxu3 %vm1337_vm2, %v1322_v25  ;;  %v1565_v24 = vpop.f32.mrf.mxu2 }
 0x22a   : > { %v1323_v26 = vpop.trf.xlu0 }
 0x22b   : > { %2244 = vmatmul.msk.f32.gmra.mxu3 %vm1337_vm2, %v1323_v26  ;;  %v1568_v29 = vpop.f32.mrf.mxu2 }
 0x232   : > { %v1324_v27 = vpop.trf.xlu0 }
 0x233   : > { %2245 = vmatmul.msk.f32.gmra.mxu3 %vm1337_vm2, %v1324_v27  ;;  %v1571_v31 = vpop.f32.mrf.mxu2 }
 0x29e   : > { %v1367_v32 = vpop.f32.mrf.mxu3 }
 0x29f   : > { %v1383_v46 = vmul.f32 %v1379_v43, %v1367_v32  ;;  %v1583_v32 = vld [vmem:[%s3632_s21 + $0x30] sm:$0xff] }
 0x2a6   : > { %v1370_v33 = vpop.f32.mrf.mxu3 }
 0x2a7   : > { %v1384_v44 = vmul.f32 %v1380_v39, %v1370_v33  ;;  %v1584_v33 = vld [vmem:[%s3632_s21 + $0x38] sm:$0xff] }
 0x2ae   : > { %v1373_v34 = vpop.f32.mrf.mxu3 }
 0x2af   : > { %v1385_v40 = vmul.f32 %v1381_v36, %v1373_v34  ;;  %v1582_v34 = vld [vmem:[%s3632_s21 + $0x28] sm:$0xff]  ;;  %v1591_v36 = vmul.f32 %v1583_v32, %v1571_v31 }
 0x2b0   : > { %v1590_v39 = vmul.f32 %v1582_v34, %v1568_v29 }
 0x2b6   : > { %v1376_v37 = vpop.f32.mrf.mxu3 }
 0x2b7   : > { %v1386_v38 = vmul.f32 %v1382_v35, %v1376_v37  ;;  %v1574_v35 = vpop.f32.mrf.mxu2 }
 0x2b8   : > { %v1592_v37 = vmul.f32 %v1584_v33, %v1574_v35 }
 0x2b9   : > { %1405 = vmatpush.msra.mxu0 %v1386_v38  ;;  %v1581_v38 = vld [vmem:[%s3632_s21 + $0x20] sm:$0xff] }
 0x2ba   : > { %1607 = vmatpush.msrb.mxu3 %v1592_v37  ;;  %v1589_v41 = vmul.f32 %v1581_v38, %v1565_v24 }
 0x2bb   : > { %1406 = vmatpush.msra.mxu0 %v1385_v40  ;;  %v1580_v40 = vld [vmem:[%s3632_s21 + $0x18] sm:$0xff] }
 0x2bc   : > { %1608 = vmatpush.msrb.mxu3 %v1591_v36  ;;  %v1588_v43 = vmul.f32 %v1580_v40, %v1562_v20 }
 0x2bd   : > { %1407 = vmatpush.msra.mxu0 %v1384_v44  ;;  %v1578_v44 = vld [vmem:[%s3632_s21 + $0x8] sm:$0xff] }
 0x2be   : > { %1609 = vmatpush.msrb.mxu3 %v1590_v39 }
 0x2bf   : > { %1408 = vmatpush.msra.mxu0 %v1383_v46  ;;  %v1577_v46 = vld [vmem:[%s3632_s21] sm:$0xff] }
 0x2c0   : > { %2246 = vmatmul.msk.f32.vlgmr.msra.gmra.mxu0 %vm1215_vm1, %v1240_v45  ;;  %v1587_v45 = vmul.f32 %v1579_v42, %v1559_v19  ;;  %1610 = vmatpush.msrb.mxu3 %v1589_v41  ;;  %v1585_v48 = vmul.f32 %v1577_v46, %v1553_v15  ;;  %v2407_v19 = vld [vmem:[%s1155_s17] ss:$0 sm:$0xff] }
 0x2c1   : > { %1643 = vmatpush.msrb.mxu0 %v1189_v49  ;;  %v1190_v46 = vld [vmem:[%s3281_s27] sm:$0xff] }
 0x2c2   : > { %1611 = vmatpush.msrb.mxu3 %v1588_v43  ;;  %v1193_v43 = vld [vmem:[%s3281_s27 + $0x18] sm:$0xff] }
 0x2c3   : > { %1644 = vmatpush.msrb.mxu0 %v1188_v50  ;;  %1772 = vmatpush.msrb.mxu1 %v1193_v43 }
 0x2c4   : > { %1612 = vmatpush.msrb.mxu3 %v1587_v45  ;;  %v1191_v45 = vld [vmem:[%s3281_s27 + $0x8] sm:$0xff] }
 0x2c5   : > { %1645 = vmatpush.msrb.mxu0 %v1187_v52 }
 0x2c7   : > { %1646 = vmatpush.msrb.mxu0 %v1186_v16 }
 0x2c8   : > { %2247 = vmatmul.msk.f32.gmra.mxu0 %vm1215_vm1, %v1243_v47  ;;  %v1586_v47 = vmul.f32 %v1578_v44, %v1556_v18  ;;  %v1192_v44 = vld [vmem:[%s3281_s27 + $0x10] sm:$0xff] }
 0x2c9   : > { %1773 = vmatpush.msrb.mxu1 %v1192_v44  ;;  %v1196_v44 = vld [vmem:[%s3259_s25 + $0x10] sm:$0xff] }
 0x2ca   : > { %1613 = vmatpush.msrb.mxu3 %v1586_v47 }
 0x2cb   : > { %1774 = vmatpush.msrb.mxu1 %v1191_v45  ;;  %v1195_v45 = vld [vmem:[%s3259_s25 + $0x8] sm:$0xff] }
 0x2cc   : > { %1614 = vmatpush.msrb.mxu3 %v1585_v48 }
 0x2cd   : > { %1775 = vmatpush.msrb.mxu1 %v1190_v46  ;;  %v1194_v46 = vld [vmem:[%s3259_s25] sm:$0xff] }
 0x33d   : > { %v1410_v61 = vpop.f32.mrf.mxu0 }
 0x33e   : > { %v1416_v63 = vmul.f32 0.35355338, %v1410_v61 }
 0x340   : > { %v1420_v0 = vadd.f32 %v1418_v62, %v1416_v63 }
 0x342   : > { %v1423_v1 = vsel %vm1422_vm3, %v1420_v0, -inf }
 0x343   : > { %1424 = vmax.xlane.f32.xlu1 %v1423_v1 }
 0x345   : > { %v1413_v3 = vpop.f32.mrf.mxu0 }
 0x346   : > { %v1417_v6 = vmul.f32 0.35355338, %v1413_v3 }
 0x348   : > { %v1421_v7 = vadd.f32 %v1419_v5, %v1417_v6 }
 0x34a   : > { %v1426_v9 = vsel %vm1422_vm3, %v1421_v7, -inf }
 0x34b   : > { %1427 = vmax.xlane.f32.xlu1 %v1426_v9 }
 0x3b6   : > { %v1425_v21 = vpop.xlane.xlu1 %1424 }
 0x3b7   : > { %v1429_v22 = vsub.f32 %v1420_v0, %v1425_v21 }
 0x3b9   : > { %v1431_v23 = vmul.f32 1.442695, %v1429_v22 }
 0x3bb   : > { %2414 = vpow2.f32 %v1431_v23 }
 0x3be   : > { %v1428_v25 = vpop.xlane.xlu1 %1427 }
 0x3bf   : > { %v1430_v26 = vsub.f32 %v1421_v7, %v1428_v25 }
 0x3c1   : > { %v2415_v27 = vpop.eup %2414  ;;  %v1433_v28 = vmul.f32 1.442695, %v1430_v26 }
 0x3c2   : > { %2248 = vmatmul.msk.f32.vlgmr.msra.gmra.mxu1 %vm1422_vm3, %v2415_v27 }
 0x3c3   : > { %2416 = vpow2.f32 %v1433_v28  ;;  %v2856_v28 = vmov 32.0  }
 0x3c9   : > { %v3398_v30 = vpop.eup %2416 }
 0x3ca   : > { %2249 = vmatmul.msk.f32.gmra.mxu1 %vm1422_vm3, %v3398_v30 }
 0x43f   : > { %v1466_v51 = vpop.f32.mrf.mxu1 }
 0x440   : > { %v1472_v53 = vmax.f32 %v1466_v51, 1e-20 }
 0x442   : > { %2418 = vrcp.f32 %v1472_v53  ;;  %v1485_v59 = vand.u32 2147483648, %v1472_v53  ;;  %v1483_v61 = vand.u32 2147483647, %v1472_v53  ;;  %vm1479_vm5 = vweird.f32 %v1472_v53 }
 0x444   : > { %v1486_v0 = vor.u32 1.1754944e-38, %v1485_v59  ;;  %vm1484_vm7 = vcmp.eq.f32.partialorder %v1483_v61, 8.507059e+37 }
 0x447   : > { %v1469_v54 = vpop.f32.mrf.mxu1 }
 0x448   : > { %v2419_v55 = vpop.eup %2418  ;;  %v1473_v56 = vmax.f32 %v1469_v54, 1e-20 }
 0x449   : > { %v1475_v57 = vmul.f32 %v2419_v55, %v1472_v53  ;;  %vm1480_vm4 = vweird.f32 %v2419_v55 }
 0x44a   : > { %2420 = vrcp.f32 %v1473_v56  ;;  %vm1481_vm6 = vmor %vm1479_vm5, %vm1480_vm4  ;;  %v1500_v7 = vand.u32 2147483648, %v1473_v56  ;;  %v1498_v10 = vand.u32 2147483647, %v1473_v56  ;;  %vm1494_vm9 = vweird.f32 %v1473_v56 }
 0x44b   : > { %v1476_v58 = vsub.f32 1.0, %v1475_v57  ;;  %2422 = vrcp.f32 %v2856_v28 }
 0x44c   : > { %v1501_v12 = vor.u32 1.1754944e-38, %v1500_v7  ;;  %vm1499_vm11 = vcmp.eq.f32.partialorder %v1498_v10, 8.507059e+37  ;;  %v1199_v7 = vld [vmem:[%s3259_s25 + $0x28] sm:$0xff]  ;;  %v1198_v10 = vld [vmem:[%s3259_s25 + $0x20] sm:$0xff] }
 0x44d   : > { %v1477_v60 = vmul.f32 %v2419_v55, %v1476_v58 }
 0x44f   : > { %v1478_v62 = vadd.f32 %v2419_v55, %v1477_v60 }
 0x450   : > { %v2421_v63 = vpop.eup %2420 }
 0x451   : > { %v1490_v1 = vmul.f32 %v2421_v63, %v1473_v56  ;;  %v1482_v2 = vsel %vm1481_vm6, %v2419_v55, %v1478_v62  ;;  %vm1495_vm8 = vweird.f32 %v2421_v63  ;;  %v2423_v29 = vpop.eup %2422 }
 0x452   : > { %v1487_v3 = vsel %vm1484_vm7, %v1486_v0, %v1482_v2  ;;  %vm1496_vm10 = vmor %vm1494_vm9, %vm1495_vm8  ;;  %vm1667_vm12 = vweird.f32 %v2423_v29 }
 0x453   : > { %v1491_v5 = vsub.f32 1.0, %v1490_v1  ;;  %v1488_v6 = vmul.f32 %v2415_v27, %v1487_v3  ;;  %v1201_v3 = vld [vmem:[%s3259_s25 + $0x38] sm:$0xff] }
 0x454   : > { %1802 = vmatpush.msra.mxu3 %v1201_v3 }
 0x455   : > { %2258 = vmatmul.msk.f32.vlgmr.msrb.gmra.mxu3 %vm1422_vm3, %v1488_v6  ;;  %v1492_v9 = vmul.f32 %v2421_v63, %v1491_v5  ;;  %v1200_v5 = vld [vmem:[%s3259_s25 + $0x30] sm:$0xff] }
 0x456   : > { %1803 = vmatpush.msra.mxu3 %v1200_v5 }
 0x457   : > { %v1493_v11 = vadd.f32 %v2421_v63, %v1492_v9 }
 0x458   : > { %1804 = vmatpush.msra.mxu3 %v1199_v7 }
 0x459   : > { %v1497_v13 = vsel %vm1496_vm10, %v2421_v63, %v1493_v11 }
 0x45a   : > { %v1502_v14 = vsel %vm1499_vm11, %v1501_v12, %v1497_v13  ;;  %v1197_v13 = vld [vmem:[%s3259_s25 + $0x18] sm:$0xff]  ;;  %1805 = vmatpush.msra.mxu3 %v1198_v10 }
 0x45b   : > { %v1503_v15 = vmul.f32 %v3398_v30, %v1502_v14  ;;  %v1663_v30 = vmul.f32 32.0, %v2423_v29 }
 0x45c   : > { %1806 = vmatpush.msra.mxu3 %v1197_v13 }
 0x45d   : > { %2259 = vmatmul.msk.f32.gmra.mxu3 %vm1422_vm3, %v1503_v15  ;;  %v1664_v31 = vsub.f32 1.0, %v1663_v30  ;;  %v2409_v30 = vld [vmem:[%s985_s30] ss:$0 sm:$0xff] }
 0x45e   : > { %1807 = vmatpush.msra.mxu3 %v1196_v44  ;;  %v2412_v44 = vld [vmem:[%s994_s5] ss:$0 sm:$0xff] }
 0x45f   : > { %v1665_v32 = vmul.f32 %v2423_v29, %v1664_v31 }
 0x460   : > { %1808 = vmatpush.msra.mxu3 %v1195_v45 }
 0x461   : > { %v1666_v33 = vadd.f32 %v2423_v29, %v1665_v32 }
 0x462   : > { %1809 = vmatpush.msra.mxu3 %v1194_v46 }
 0x4d8   : > { %v1616_v17 = vpop.f32.mrf.mxu3 }
 0x4d9   : > { %2260 = vmatmul.msk.f32.vlgmr.msrb.gmra.mxu0 %vm1215_vm1, %v1616_v17 }
 0x4e0   : > { %v1619_v18 = vpop.f32.mrf.mxu3 }
 0x4e1   : > { %2261 = vmatmul.msk.f32.gmra.mxu0 %vm1215_vm1, %v1619_v18 }
 0x556   : > { %v1648_v20 = vpop.f32.mrf.mxu0 }
 0x557   : > { %v1649_v21 = vadd.f32 %v2407_v19, %v1648_v20 }
 0x559   : > { %v1654_v22 = vadd.f32 %v1649_v21, %v3298_v8  ;;  %v3444_v8 = vsel %vm1667_vm12, %v2423_v29, %v1666_v33 }
 0x55b   : > { %v1656_v23 = vsel %vm1215_vm1, %v1654_v22, 0.0 }
 0x55c   : > { %1657 = vadd.xlane.f32.xlu2 %v1656_v23 }
 0x55e   : > { %v1651_v24 = vpop.f32.mrf.mxu0 }
 0x55f   : > { %v1652_v25 = vadd.f32 %v2407_v19, %v1651_v24 }
 0x561   : > { %v1655_v26 = vadd.f32 %v1652_v25, %v3296_v4 }
 0x563   : > { %v1659_v27 = vsel %vm1215_vm1, %v1655_v26, 0.0 }
 0x564   : > { %1660 = vadd.xlane.f32.xlu2 %v1659_v27 }
 0x5cf   : > { %v1658_v34 = vpop.xlane.xlu2 %1657 }
 0x5d0   : > { %v1669_v35 = vmul.f32 %v3444_v8, %v1658_v34 }
 0x5d2   : > { %v3447_v4 = vsub.f32 %v1654_v22, %v1669_v35 }
 0x5d4   : > { %v1673_v36 = vmul.f32 %v3447_v4, %v3447_v4 }
 0x5d6   : > { %v1675_v37 = vsel %vm1215_vm1, %v1673_v36, 0.0 }
 0x5d7   : > { %1676 = vadd.xlane.f32.xlu0 %v1675_v37  ;;  %v1661_v38 = vpop.xlane.xlu2 %1660 }
 0x5d8   : > { %v1670_v39 = vmul.f32 %v3444_v8, %v1661_v38 }
 0x5da   : > { %v3453_v40 = vsub.f32 %v1655_v26, %v1670_v39  ;;  %v2408_v26 = vld [vmem:[%s976_s12] ss:$0 sm:$0xff] }
 0x5dc   : > { %v1674_v41 = vmul.f32 %v3453_v40, %v3453_v40 }
 0x5de   : > { %v1678_v42 = vsel %vm1215_vm1, %v1674_v41, 0.0 }
 0x5df   : > { %1679 = vadd.xlane.f32.xlu1 %v1678_v42 }
 0x64a   : > { %v1677_v47 = vpop.xlane.xlu0 %1676 }
 0x64b   : > { %v1681_v48 = vmul.f32 %v1677_v47, %v3444_v8  ;;  %v2410_v47 = vld [vmem:[%s1158_s24] ss:$0 sm:$0xff] }
 0x64d   : > { %v1683_v49 = vadd.f32 1e-05, %v1681_v48 }
 0x64f   : > { %2424 = vrsqrt.f32 %v1683_v49  ;;  %vm1692_vm13 = vcmp.eq.f32.partialorder %v1683_v49, inf  ;;  %v1695_v63 = vand.u32 2147483648, %v1683_v49  ;;  %vm1694_vm14 = vcmp.eq.f32.partialorder %v1683_v49, 0.0 }
 0x652   : > { %v1680_v50 = vpop.xlane.xlu1 %1679 }
 0x653   : > { %v1682_v51 = vmul.f32 %v1680_v50, %v3444_v8 }
 0x655   : > { %v2425_v52 = vpop.eup %2424  ;;  %v1684_v53 = vadd.f32 1e-05, %v1682_v51 }
 0x656   : > { %v1686_v54 = vmul.f32 %v2425_v52, %v1683_v49 }
 0x657   : > { %2426 = vrsqrt.f32 %v1684_v53  ;;  %vm1704_vm15 = vcmp.eq.f32.partialorder %v1684_v53, inf  ;;  %v1707_v12 = vand.u32 2147483648, %v1684_v53  ;;  %vm1706_vm0 = vcmp.eq.f32.partialorder %v1684_v53, 0.0 }
 0x658   : > { %v1687_v55 = vmul.f32 %v2425_v52, %v1686_v54 }
 0x65a   : > { %v1688_v56 = vmul.f32 0.5, %v1687_v55 }
 0x65c   : > { %v1689_v57 = vsub.f32 1.5, %v1688_v56 }
 0x65d   : > { %v2427_v58 = vpop.eup %2426 }
 0x65e   : > { %v1690_v59 = vmul.f32 %v2425_v52, %v1689_v57  ;;  %v1698_v60 = vmul.f32 %v2427_v58, %v1684_v53 }
 0x660   : > { %v1691_v61 = vmul.f32 %v1690_v59, %v1683_v49  ;;  %v1699_v62 = vmul.f32 %v2427_v58, %v1698_v60 }
 0x662   : > { %v1693_v0 = vsel %vm1692_vm13, %v1683_v49, %v1691_v61  ;;  %v1700_v1 = vmul.f32 0.5, %v1699_v62 }
 0x663   : > { %v1696_v2 = vsel %vm1694_vm14, %v1695_v63, %v1693_v0 }
 0x664   : > { %v1701_v6 = vsub.f32 1.5, %v1700_v1  ;;  %2428 = vrcp.f32 %v1696_v2  ;;  %v1720_v19 = vand.u32 2147483648, %v1696_v2  ;;  %v1718_v21 = vand.u32 2147483647, %v1696_v2 }
 0x665   : > { %vm1714_vm4 = vweird.f32 %v1696_v2 }
 0x666   : > { %v1702_v9 = vmul.f32 %v2427_v58, %v1701_v6  ;;  %v1721_v24 = vor.u32 1.1754944e-38, %v1720_v19  ;;  %vm1719_vm6 = vcmp.eq.f32.partialorder %v1718_v21, 8.507059e+37 }
 0x668   : > { %v1703_v11 = vmul.f32 %v1702_v9, %v1684_v53 }
 0x66a   : > { %v2429_v14 = vpop.eup %2428  ;;  %v1705_v15 = vsel %vm1704_vm15, %v1684_v53, %v1703_v11  ;;  %v2411_v53 = vld [vmem:[%s967_s11] ss:$0 sm:$0xff] }
 0x66b   : > { %v1710_v16 = vmul.f32 %v2429_v14, %v1696_v2  ;;  %v1708_v17 = vsel %vm1706_vm0, %v1707_v12, %v1705_v15  ;;  %vm1715_vm2 = vweird.f32 %v2429_v14 }
 0x66c   : > { %2430 = vrcp.f32 %v1708_v17  ;;  %vm1716_vm5 = vmor %vm1714_vm4, %vm1715_vm2  ;;  %v1735_v32 = vand.u32 2147483648, %v1708_v17  ;;  %v1733_v35 = vand.u32 2147483647, %v1708_v17  ;;  %vm1729_vm8 = vweird.f32 %v1708_v17 }
 0x66d   : > { %v1711_v18 = vsub.f32 1.0, %v1710_v16 }
 0x66e   : > { %v1736_v38 = vor.u32 1.1754944e-38, %v1735_v32  ;;  %vm1734_vm10 = vcmp.eq.f32.partialorder %v1733_v35, 8.507059e+37 }
 0x66f   : > { %v1712_v20 = vmul.f32 %v2429_v14, %v1711_v18 }
 0x671   : > { %v1713_v22 = vadd.f32 %v2429_v14, %v1712_v20 }
 0x672   : > { %v2431_v23 = vpop.eup %2430 }
 0x673   : > { %v1717_v25 = vsel %vm1716_vm5, %v2429_v14, %v1713_v22  ;;  %v1725_v27 = vmul.f32 %v2431_v23, %v1708_v17  ;;  %vm1730_vm7 = vweird.f32 %v2431_v23 }
 0x674   : > { %v1722_v28 = vsel %vm1719_vm6, %v1721_v24, %v1717_v25  ;;  %vm1731_vm9 = vmor %vm1729_vm8, %vm1730_vm7 }
 0x675   : > { %v1739_v29 = vmul.f32 %v1722_v28, %v3447_v4  ;;  %v1726_v31 = vsub.f32 1.0, %v1725_v27 }
 0x677   : > { %v1744_v33 = vmul.f32 %v2408_v26, %v1739_v29  ;;  %v1727_v34 = vmul.f32 %v2431_v23, %v1726_v31 }
 0x679   : > { %v1749_v36 = vadd.f32 %v2409_v30, %v1744_v33  ;;  %v1728_v37 = vadd.f32 %v2431_v23, %v1727_v34 }
 0x67b   : > { %2262 = vmatmul.msk.f32.vlgmr.msrb.gmra.mxu1 %vm1215_vm1, %v1749_v36  ;;  %v1732_v4 = vsel %vm1731_vm9, %v2431_v23, %v1728_v37 }
 0x67c   : > { %v1737_v39 = vsel %vm1734_vm10, %v1736_v38, %v1732_v4 }
 0x67d   : > { %v1740_v41 = vmul.f32 %v1737_v39, %v3453_v40 }
 0x67f   : > { %v1745_v42 = vmul.f32 %v2408_v26, %v1740_v41 }
 0x681   : > { %v1750_v43 = vadd.f32 %v2409_v30, %v1745_v42 }
 0x683   : > { %2263 = vmatmul.msk.f32.gmra.mxu1 %vm1215_vm1, %v1750_v43 }
 0x6f8   : > { %v1777_v48 = vpop.f32.mrf.mxu1 }
 0x6f9   : > { %v1778_v49 = vadd.f32 %v2410_v47, %v1777_v48  ;;  %v2413_v48 = vld [vmem:[%s1003_s0] ss:$0 sm:$0xff] }
 0x6fb   : > { %v1783_v50 = vmax.f32 %v1778_v49, 0.0 }
 0x6fd   : > { %2264 = vmatmul.msk.f32.vlgmr.msra.gmra.mxu3 %vm1422_vm3, %v1783_v50 }
 0x700   : > { %v1780_v40 = vpop.f32.mrf.mxu1 }
 0x701   : > { %v1781_v51 = vadd.f32 %v2410_v47, %v1780_v40 }
 0x703   : > { %v1784_v52 = vmax.f32 %v1781_v51, 0.0 }
 0x705   : > { %2265 = vmatmul.msk.f32.gmra.mxu3 %vm1422_vm3, %v1784_v52 }
 0x780   : > { %v1811_v54 = vpop.f32.mrf.mxu3 }
 0x781   : > { %v1812_v55 = vadd.f32 %v2411_v53, %v1811_v54 }
 0x783   : > { %v1817_v56 = vadd.f32 %v1812_v55, %v1749_v36 }
 0x785   : > { %v1819_v57 = vsel %vm1215_vm1, %v1817_v56, 0.0 }
 0x786   : > { %1820 = vadd.xlane.f32.xlu2 %v1819_v57 }
 0x788   : > { %v1814_v58 = vpop.f32.mrf.mxu3 }
 0x789   : > { %v1815_v59 = vadd.f32 %v2411_v53, %v1814_v58 }
 0x78b   : > { %v1818_v60 = vadd.f32 %v1815_v59, %v1750_v43 }
 0x78d   : > { %v1822_v61 = vsel %vm1215_vm1, %v1818_v60, 0.0 }
 0x78e   : > { %1823 = vadd.xlane.f32.xlu1 %v1822_v61 }
 0x7f9   : > { %v1821_v62 = vpop.xlane.xlu2 %1820 }
 0x7fa   : > { %v1825_v63 = vmul.f32 %v1821_v62, %v3444_v8 }
 0x7fc   : > { %v1827_v0 = vsub.f32 %v1817_v56, %v1825_v63 }
 0x7fe   : > { %v1829_v1 = vmul.f32 %v1827_v0, %v1827_v0 }
 0x800   : > { %v1831_v2 = vsel %vm1215_vm1, %v1829_v1, 0.0 }
 0x801   : > { %v1824_v3 = vpop.xlane.xlu1 %1823  ;;  %1832 = vadd.xlane.f32.xlu2 %v1831_v2 }
 0x802   : > { %v1826_v5 = vmul.f32 %v1824_v3, %v3444_v8 }
 0x804   : > { %v3494_v6 = vsub.f32 %v1818_v60, %v1826_v5 }
 0x806   : > { %v1830_v7 = vmul.f32 %v3494_v6, %v3494_v6 }
 0x808   : > { %v1834_v9 = vsel %vm1215_vm1, %v1830_v7, 0.0 }
 0x809   : > { %1835 = vadd.xlane.f32.xlu1 %v1834_v9 }
 0x874   : > { %v1833_v10 = vpop.xlane.xlu2 %1832 }
 0x875   : > { %v1837_v11 = vmul.f32 %v1833_v10, %v3444_v8 }
 0x877   : > { %v1839_v12 = vadd.f32 1e-05, %v1837_v11 }
 0x879   : > { %2432 = vrsqrt.f32 %v1839_v12  ;;  %vm1848_vm3 = vcmp.eq.f32.partialorder %v1839_v12, inf  ;;  %v1851_v26 = vand.u32 2147483648, %v1839_v12  ;;  %vm1850_vm11 = vcmp.eq.f32.partialorder %v1839_v12, 0.0 }
 0x87c   : > { %v1836_v13 = vpop.xlane.xlu1 %1835 }
 0x87d   : > { %v1838_v14 = vmul.f32 %v1836_v13, %v3444_v8 }
 0x87f   : > { %v2433_v15 = vpop.eup %2432  ;;  %v1840_v16 = vadd.f32 1e-05, %v1838_v14 }
 0x880   : > { %v1842_v17 = vmul.f32 %v2433_v15, %v1839_v12 }
 0x881   : > { %2434 = vrsqrt.f32 %v1840_v16  ;;  %vm1860_vm12 = vcmp.eq.f32.partialorder %v1840_v16, inf  ;;  %v1863_v33 = vand.u32 2147483648, %v1840_v16  ;;  %vm1862_vm13 = vcmp.eq.f32.partialorder %v1840_v16, 0.0 }
 0x882   : > { %v1843_v18 = vmul.f32 %v2433_v15, %v1842_v17 }
 0x884   : > { %v1844_v19 = vmul.f32 0.5, %v1843_v18 }
 0x886   : > { %v1845_v20 = vsub.f32 1.5, %v1844_v19 }
 0x887   : > { %v2435_v21 = vpop.eup %2434 }
 0x888   : > { %v1846_v22 = vmul.f32 %v2433_v15, %v1845_v20  ;;  %v1854_v23 = vmul.f32 %v2435_v21, %v1840_v16 }
 0x88a   : > { %v1847_v24 = vmul.f32 %v1846_v22, %v1839_v12  ;;  %v1855_v25 = vmul.f32 %v2435_v21, %v1854_v23 }
 0x88c   : > { %v1849_v27 = vsel %vm1848_vm3, %v1839_v12, %v1847_v24  ;;  %v1856_v28 = vmul.f32 0.5, %v1855_v25 }
 0x88d   : > { %v1852_v29 = vsel %vm1850_vm11, %v1851_v26, %v1849_v27 }
 0x88e   : > { %2436 = vrcp.f32 %v1852_v29  ;;  %v1857_v8 = vsub.f32 1.5, %v1856_v28  ;;  %v1876_v38 = vand.u32 2147483648, %v1852_v29  ;;  %v1874_v39 = vand.u32 2147483647, %v1852_v29 }
 0x88f   : > { %vm1870_vm15 = vweird.f32 %v1852_v29 }
 0x890   : > { %v1858_v30 = vmul.f32 %v2435_v21, %v1857_v8  ;;  %v1877_v42 = vor.u32 1.1754944e-38, %v1876_v38  ;;  %vm1875_vm2 = vcmp.eq.f32.partialorder %v1874_v39, 8.507059e+37 }
 0x892   : > { %v1859_v31 = vmul.f32 %v1858_v30, %v1840_v16 }
 0x894   : > { %v2437_v32 = vpop.eup %2436  ;;  %v1861_v35 = vsel %vm1860_vm12, %v1840_v16, %v1859_v31 }
 0x895   : > { %v1866_v34 = vmul.f32 %v2437_v32, %v1852_v29  ;;  %v1864_v36 = vsel %vm1862_vm13, %v1863_v33, %v1861_v35  ;;  %vm1871_vm14 = vweird.f32 %v2437_v32 }
 0x896   : > { %2438 = vrcp.f32 %v1864_v36  ;;  %vm1872_vm0 = vmor %vm1870_vm15, %vm1871_vm14  ;;  %v1891_v51 = vand.u32 2147483648, %v1864_v36  ;;  %v1889_v53 = vand.u32 2147483647, %v1864_v36  ;;  %vm1885_vm5 = vweird.f32 %v1864_v36 }
 0x897   : > { %v1867_v37 = vsub.f32 1.0, %v1866_v34 }
 0x898   : > { %v1892_v56 = vor.u32 1.1754944e-38, %v1891_v51  ;;  %vm1890_vm7 = vcmp.eq.f32.partialorder %v1889_v53, 8.507059e+37 }
 0x899   : > { %v1868_v4 = vmul.f32 %v2437_v32, %v1867_v37 }
 0x89b   : > { %v1869_v41 = vadd.f32 %v2437_v32, %v1868_v4 }
 0x89c   : > { %v2439_v43 = vpop.eup %2438 }
 0x89d   : > { %v1873_v45 = vsel %vm1872_vm0, %v2437_v32, %v1869_v41  ;;  %v1881_v47 = vmul.f32 %v2439_v43, %v1864_v36  ;;  %vm1886_vm4 = vweird.f32 %v2439_v43 }
 0x89e   : > { %v1878_v46 = vsel %vm1875_vm2, %v1877_v42, %v1873_v45  ;;  %vm1887_vm6 = vmor %vm1885_vm5, %vm1886_vm4 }
 0x89f   : > { %v1895_v49 = vmul.f32 %v1878_v46, %v1827_v0  ;;  %v1882_v50 = vsub.f32 1.0, %v1881_v47 }
 0x8a1   : > { %v1900_v40 = vmul.f32 %v2412_v44, %v1895_v49  ;;  %v1883_v52 = vmul.f32 %v2439_v43, %v1882_v50 }
 0x8a3   : > { %v1905_v54 = vadd.f32 %v2413_v48, %v1900_v40  ;;  %v1884_v55 = vadd.f32 %v2439_v43, %v1883_v52 }
 0x8a5   : > { %1907 = vst.msk [vmem:[#allocation2] sm:$0xff] %vm1215_vm1, %v1905_v54  ;;  %v1888_v57 = vsel %vm1887_vm6, %v2439_v43, %v1884_v55 }
 0x8a6   : > { %v1893_v58 = vsel %vm1890_vm7, %v1892_v56, %v1888_v57 }
 0x8a7   : > { %v1896_v59 = vmul.f32 %v1893_v58, %v3494_v6 }
 0x8a9   : > { %v1901_v60 = vmul.f32 %v2412_v44, %v1896_v59  ;;  %1912 = sbr.rel (%p2266_p8) target bundleno = 2224 (0x8b0), region = 168 }
 0x8ab   : > { %v1906_v61 = vadd.f32 %v2413_v48, %v1901_v60 }
 0x8ad   : > { %1908 = vst.msk [vmem:[#allocation2 + $0x8] sm:$0xff] %vm1215_vm1, %v1906_v61 }
 0x8ae   : > { %1913 = vst.msk [vmem:[#allocation18] sm:$0xff] %vm1215_vm1, %v1905_v54 }
 0x8af   : > { %1914 = vst.msk [vmem:[#allocation18 + $0x8] sm:$0xff] %vm1215_vm1, %v1906_v61 }
 0x8b0 PF: > { %p2359_p9 = scmp.eq.s32.totalorder %s3004_s6, 2  ;;  %s2857_s8 = smov [#allocation18]  }
 0x8b1   : > { %s1920_s16 = sshll.u32 %s2857_s8, 4  ;;  %s3635_s24 = sld [smem:[#allocation52_spill]]  ;;  %s1921_s16 = int_to_ptr.vmem [resolvable:$true] %s1920_s16 }
 0x8b2   : > { %s2858_s12 = smov 128   ;;  %s2859_s30 = smov 8  }
 0x8b7   : > { %s1922_s11 = sshll.u32 %s3635_s24, 4  ;;  %s1923_s11 = int_to_ptr.hbm [resolvable:$true] %s1922_s11 }
 0x8b8   : > { %2312 = dma.vmem_to_hbm [thread:$0]  (%p2359_p9), %s1921_s16, 256, %s1923_s11, [#allocation5], %s2858_s12, %s2858_s12, %s2859_s30  }
 0x8b9   : > { %2831 = dma.done.wait (%p2359_p9), [#allocation5], 256  }
 0x8ba   : > { %2833 = vsyncadd (%p2359_p9), [#allocation5], 4294967040 }
 0x8bb PF: > { %s3636_s28 = sld [smem:[#allocation26_spill]] }
 0x8bc   : > { %s3637_s5 = sld [smem:[#allocation24_spill]] }
 0x8bd   : > { %s3638_s26 = sld [smem:[#allocation25_spill]] }
 0x8be   : > { %s3639_s27 = sld [smem:[#allocation27_spill]] }
 0x8c1   : > { %p35_p10 = scmp.ge.s32.totalorder %s3636_s28, 5  }
 0x8c3   :  { %37 = sbr.rel (!%p35_p10) target bundleno = 30 (0x1e), region = 269 }
 0x8c8   :  { %1939 = vsyncpa [#allocation4], 1 }
 0x8c9   :  { %1941 = vsyncpa [#allocation4 + $0x1], 1 }
 0x8ca   :  { %1942 = vsyncpa [#allocation7], 1 }
 0x8cb   :  { %1943 = vsyncpa [#allocation10], 1 }
 0x8cc   :  { %1944 = vsyncpa [#allocation5], 1 }
 0x8cd   :  { %1946 = vsyncpa [#allocation5 + $0x1], 1 }

</bundles_post_ra>
